<compile_context>
chip_gen: v6e
topology: v6e:2x2x1
jax: 0.10.0
libtpu: 0.0.40
codegen_flags: <defaults>
</compile_context>

<pallas_src>
import functools

import jax
import jax.numpy as jnp
from jax.experimental import pallas as pl
from jax.experimental.pallas import tpu as pltpu


CIN = 3            # input image channels
CH = 16            # logical channel width of the synthetic classifier
C_PAD = 128        # storage channel width (lane-dense); padded channels are 0
NUM_CLASSES = 10
NCLS_PAD = 128     # lane-dense logits storage; sliced back to NUM_CLASSES


# ----------------------------------------------------------------------------
# Pallas kernels
# ----------------------------------------------------------------------------

def _conv3x3_relu_kernel(x_ref, w_ref, b_ref, o_ref, *, H, W):
    """out = relu(conv3x3(x) + b) for one batch element.

    x_ref: (1, H+2, W+2, Cin)   zero-padded activation
    w_ref: (3, 3, Cin, Cout)
    b_ref: (1, Cout)
    o_ref: (1, H, W, Cout)
    """
    cin = x_ref.shape[-1]
    cout = o_ref.shape[-1]
    x = x_ref[0]                                        # (H+2, W+2, Cin)
    acc = jnp.zeros((H * W, cout), jnp.float32)
    for ky in range(3):                                 # 9 shifted MXU dots
        for kx in range(3):
            patch = x[ky:ky + H, kx:kx + W, :].reshape(H * W, cin)
            acc += jnp.dot(patch, w_ref[ky, kx],
                           preferred_element_type=jnp.float32)
    acc = jnp.maximum(acc + b_ref[...], 0.0)
    o_ref[...] = acc.reshape(1, H, W, cout).astype(o_ref.dtype)


def _conv3x3_res_relu_gap_kernel(x_ref, w_ref, b_ref, res_ref, pooled_ref,
                                 *, H, W):
    """pooled = mean_{h,w} relu(conv3x3(x) + b + res) for one batch element.

    The full output activation is never written to HBM; only the pooled
    (1, 1, Cout) vector is.
    """
    cin = x_ref.shape[-1]
    cout = pooled_ref.shape[-1]
    x = x_ref[0]
    acc = jnp.zeros((H * W, cout), jnp.float32)
    for ky in range(3):
        for kx in range(3):
            patch = x[ky:ky + H, kx:kx + W, :].reshape(H * W, cin)
            acc += jnp.dot(patch, w_ref[ky, kx],
                           preferred_element_type=jnp.float32)
    acc = acc + b_ref[...]
    acc = acc + res_ref[0].reshape(H * W, cout).astype(jnp.float32)
    acc = jnp.maximum(acc, 0.0)
    pooled_ref[...] = jnp.mean(acc, axis=0, keepdims=True).reshape(1, 1, cout)


def _fc_kernel(x_ref, w_ref, b_ref, o_ref):
    o_ref[...] = (jnp.dot(x_ref[...], w_ref[...],
                          preferred_element_type=jnp.float32)
                  + b_ref[...]).astype(o_ref.dtype)


# ----------------------------------------------------------------------------
# pallas_call wrappers
# ----------------------------------------------------------------------------

def conv3x3_relu(x_pad, w, b, out_dtype=jnp.bfloat16):
    """relu(conv3x3(x)+b) on an already zero-padded NHWC activation."""
    n, hp, wp, cin = x_pad.shape
    H, W = hp - 2, wp - 2
    cout = w.shape[-1]
    flops = 2 * n * H * W * 9 * cin * cout
    bytes_accessed = int(x_pad.size * x_pad.dtype.itemsize
                         + w.size * w.dtype.itemsize
                         + b.size * b.dtype.itemsize
                         + n * H * W * cout * jnp.dtype(out_dtype).itemsize)
    return pl.pallas_call(
        functools.partial(_conv3x3_relu_kernel, H=H, W=W),
        out_shape=jax.ShapeDtypeStruct((n, H, W, cout), out_dtype),
        grid=(n,),
        in_specs=[
            pl.BlockSpec((1, hp, wp, cin), lambda i: (i, 0, 0, 0)),
            pl.BlockSpec((3, 3, cin, cout), lambda i: (0, 0, 0, 0)),
            pl.BlockSpec((1, cout), lambda i: (0, 0)),
        ],
        out_specs=pl.BlockSpec((1, H, W, cout), lambda i: (i, 0, 0, 0)),
        compiler_params=pltpu.CompilerParams(
            dimension_semantics=("parallel",)),
        cost_estimate=pl.CostEstimate(flops=flops, transcendentals=0,
                                      bytes_accessed=bytes_accessed),
    )(x_pad, w, b.reshape(1, cout))


def conv3x3_res_relu_gap(x_pad, w, b, res):
    """mean_{h,w} relu(conv3x3(x)+b+res); fuses the global average pool."""
    n, hp, wp, cin = x_pad.shape
    H, W = hp - 2, wp - 2
    cout = w.shape[-1]
    flops = 2 * n * H * W * 9 * cin * cout
    bytes_accessed = int(x_pad.size * x_pad.dtype.itemsize
                         + w.size * w.dtype.itemsize
                         + b.size * b.dtype.itemsize
                         + res.size * res.dtype.itemsize
                         + n * cout * 4)
    out = pl.pallas_call(
        functools.partial(_conv3x3_res_relu_gap_kernel, H=H, W=W),
        out_shape=jax.ShapeDtypeStruct((n, 1, cout), jnp.float32),
        grid=(n,),
        in_specs=[
            pl.BlockSpec((1, hp, wp, cin), lambda i: (i, 0, 0, 0)),
            pl.BlockSpec((3, 3, cin, cout), lambda i: (0, 0, 0, 0)),
            pl.BlockSpec((1, cout), lambda i: (0, 0)),
            pl.BlockSpec((1, H, W, cout), lambda i: (i, 0, 0, 0)),
        ],
        out_specs=pl.BlockSpec((1, 1, cout), lambda i: (i, 0, 0)),
        compiler_params=pltpu.CompilerParams(
            dimension_semantics=("parallel",)),
        cost_estimate=pl.CostEstimate(flops=flops, transcendentals=0,
                                      bytes_accessed=bytes_accessed),
    )(x_pad, w, b.reshape(1, cout), res)
    return out.reshape(n, cout)


def fc(x, w, b):
    n, _ = x.shape
    cout = w.shape[-1]
    return pl.pallas_call(
        _fc_kernel,
        out_shape=jax.ShapeDtypeStruct((n, cout), jnp.float32),
    )(x, w, b.reshape(1, cout))


# ----------------------------------------------------------------------------
# Parameters (logical 16-channel network, stored zero-padded / lane-dense)
# ----------------------------------------------------------------------------

def init_params(key):
    ks = jax.random.split(key, 4)
    w_stem = 0.1 * jax.random.normal(ks[0], (3, 3, CIN, CH), jnp.float32)
    w1 = 0.1 * jax.random.normal(ks[1], (3, 3, CH, CH), jnp.float32)
    w2 = 0.1 * jax.random.normal(ks[2], (3, 3, CH, CH), jnp.float32)
    w_fc = 0.1 * jax.random.normal(ks[3], (CH, NUM_CLASSES), jnp.float32)

    def pad_conv(wgt, cin_t, cout_t, dtype):
        return jnp.pad(wgt, ((0, 0), (0, 0),
                             (0, cin_t - wgt.shape[2]),
                             (0, cout_t - wgt.shape[3]))).astype(dtype)

    return {
        # stem stays f32 (K = 3 is tiny); Cout zero-padded to 128 lanes
        "w_stem": pad_conv(w_stem, CIN, C_PAD, jnp.float32),   # (3,3,3,128)
        "b_stem": jnp.zeros((C_PAD,), jnp.float32),
        # block convs: bf16 storage, channels zero-padded to 128x128
        "w1": pad_conv(w1, C_PAD, C_PAD, jnp.bfloat16),        # (3,3,128,128)
        "b1": jnp.zeros((C_PAD,), jnp.float32),
        "w2": pad_conv(w2, C_PAD, C_PAD, jnp.bfloat16),
        "b2": jnp.zeros((C_PAD,), jnp.float32),
        # FC head, zero-padded to lane-dense (128, 128)
        "w_fc": jnp.pad(w_fc, ((0, C_PAD - CH),
                               (0, NCLS_PAD - NUM_CLASSES))),
        "b_fc": jnp.zeros((NCLS_PAD,), jnp.float32),
    }


# ----------------------------------------------------------------------------
# Forward pass
# ----------------------------------------------------------------------------

def _pad_hw(x_nhwc):
    return jnp.pad(x_nhwc, ((0, 0), (1, 1), (1, 1), (0, 0)))


def resnet_forward(params, x_nchw):
    x = jnp.transpose(x_nchw, (0, 2, 3, 1))                 # NCHW -> NHWC

    # Stem: conv3x3 -> ReLU  (f32 in, bf16 out, 128 padded channels)
    hstem = conv3x3_relu(_pad_hw(x), params["w_stem"], params["b_stem"],
                         out_dtype=jnp.bfloat16)             # (N,H,W,128)

    # Basic residual block: relu(conv(relu(conv(x))) + x), GAP fused into
    # the second conv's epilogue.
    h1 = conv3x3_relu(_pad_hw(hstem), params["w1"], params["b1"],
                      out_dtype=jnp.bfloat16)                # (N,H,W,128)
    pooled = conv3x3_res_relu_gap(_pad_hw(h1), params["w2"], params["b2"],
                                  hstem)                     # (N,128) f32

    # FC head on lane-dense padded logits, slice back to NUM_CLASSES.
    logits_pad = fc(pooled, params["w_fc"], params["b_fc"])  # (N,128)
    return logits_pad[:, :NUM_CLASSES]


def purify_op(x):
    # purify() in the reference PyTorch module is the identity; returning x
    # directly avoids a pointless HBM->VMEM->HBM round trip.
    return x


def resnet_adv_model_forward(params, x, mode="purify_and_classify"):
    if mode == "purify":
        out = purify_op(x)
    elif mode == "classify":
        out = resnet_forward(params, x)
    elif mode == "purify_and_classify":
        x = purify_op(x)
        out = resnet_forward(params, x)
    else:
        raise NotImplementedError(f"unknown mode: {mode}")
    return out


if __name__ == "__main__":
    key = jax.random.PRNGKey(0)
    pkey, xkey = jax.random.split(key)
    params = init_params(pkey)

    # PyTorch-style NCHW image batch.
    x = jax.random.normal(xkey, (2, CIN, 16, 16), jnp.float32)

    logits = resnet_adv_model_forward(params, x, mode="purify_and_classify")
    jax.block_until_ready(logits)
    assert logits.shape == (2, NUM_CLASSES)
    assert bool(jnp.all(jnp.isfinite(logits)))

    # Exercise the other modes (identity purify / classify-only).
    purified = jax.block_until_ready(
        resnet_adv_model_forward(params, x, mode="purify"))
    assert purified.shape == x.shape
    classified = jax.block_until_ready(
        resnet_adv_model_forward(params, x, mode="classify"))
    assert classified.shape == (2, NUM_CLASSES)

    print("KERNEL_OK")
</pallas_src>

<mosaic_0001>
module attributes {stable_mosaic.version = 11 : i64} {
  func.func @_conv3x3_relu_kernel(%arg0: i32, %arg1: memref<1x18x18x3xf32, #tpu.memory_space<vmem>>, %arg2: memref<3x3x3x128xf32, #tpu.memory_space<vmem>>, %arg3: memref<1x128xf32, #tpu.memory_space<vmem>>, %arg4: memref<1x16x16x128xbf16, #tpu.memory_space<vmem>>) attributes {dimension_semantics = [#tpu.dimension_semantics<parallel>], iteration_bounds = array<i64: 2>, scalar_prefetch = 0 : i64, scratch_operands = 0 : i64, tpu.core_type = #tpu.core_type<tc>, window_params = [{transform_indices = @transform_0, window_bounds = array<i64: 1, 18, 18, 3>}, {pipeline_mode = #tpu.pipeline_mode<synchronous>, transform_indices = @transform_1, window_bounds = array<i64: 3, 3, 3, 128>}, {pipeline_mode = #tpu.pipeline_mode<synchronous>, transform_indices = @transform_2, window_bounds = array<i64: 1, 128>}, {transform_indices = @transform_3, window_bounds = array<i64: 1, 16, 16, 128>}]} {
    %c0 = arith.constant 0 : index
    %c0_0 = arith.constant 0 : index
    %c0_1 = arith.constant 0 : index
    %c0_2 = arith.constant 0 : index
    %0 = vector.load %arg1[%c0, %c0_0, %c0_1, %c0_2] : memref<1x18x18x3xf32, #tpu.memory_space<vmem>>, vector<1x18x18x3xf32>
    %1 = vector.shape_cast %0 : vector<1x18x18x3xf32> to vector<18x18x3xf32>
    %cst = arith.constant 0.000000e+00 : f32
    %2 = vector.broadcast %cst : f32 to vector<256x128xf32>
    %3 = vector.extract_strided_slice %1 {offsets = [0, 0, 0], sizes = [16, 16, 3], strides = [1, 1, 1]} : vector<18x18x3xf32> to vector<16x16x3xf32>
    %4 = vector.shape_cast %3 : vector<16x16x3xf32> to vector<256x3xf32>
    %c0_3 = arith.constant 0 : index
    %c0_4 = arith.constant 0 : index
    %c0_5 = arith.constant 0 : index
    %c0_6 = arith.constant 0 : index
    %5 = vector.load %arg2[%c0_3, %c0_4, %c0_5, %c0_6] : memref<3x3x3x128xf32, #tpu.memory_space<vmem>>, vector<1x1x3x128xf32>
    %6 = vector.shape_cast %5 : vector<1x1x3x128xf32> to vector<3x128xf32>
    %cst_7 = arith.constant dense<0.000000e+00> : vector<256x128xf32>
    %7 = tpu.matmul %4, %6, %cst_7 {dimension_numbers = #tpu.dot_dimension_numbers<[1], [0], [0], [1], [0, 0, 1, 1], [], []>} : vector<256x3xf32>, vector<3x128xf32>, vector<256x128xf32> -> vector<256x128xf32>
    %8 = arith.addf %2, %7 : vector<256x128xf32>
    %9 = vector.extract_strided_slice %1 {offsets = [0, 1, 0], sizes = [16, 16, 3], strides = [1, 1, 1]} : vector<18x18x3xf32> to vector<16x16x3xf32>
    %10 = vector.shape_cast %9 : vector<16x16x3xf32> to vector<256x3xf32>
    %c0_8 = arith.constant 0 : index
    %c1 = arith.constant 1 : index
    %c0_9 = arith.constant 0 : index
    %c0_10 = arith.constant 0 : index
    %11 = vector.load %arg2[%c0_8, %c1, %c0_9, %c0_10] : memref<3x3x3x128xf32, #tpu.memory_space<vmem>>, vector<1x1x3x128xf32>
    %12 = vector.shape_cast %11 : vector<1x1x3x128xf32> to vector<3x128xf32>
    %cst_11 = arith.constant dense<0.000000e+00> : vector<256x128xf32>
    %13 = tpu.matmul %10, %12, %cst_11 {dimension_numbers = #tpu.dot_dimension_numbers<[1], [0], [0], [1], [0, 0, 1, 1], [], []>} : vector<256x3xf32>, vector<3x128xf32>, vector<256x128xf32> -> vector<256x128xf32>
    %14 = arith.addf %8, %13 : vector<256x128xf32>
    %15 = vector.extract_strided_slice %1 {offsets = [0, 2, 0], sizes = [16, 16, 3], strides = [1, 1, 1]} : vector<18x18x3xf32> to vector<16x16x3xf32>
    %16 = vector.shape_cast %15 : vector<16x16x3xf32> to vector<256x3xf32>
    %c0_12 = arith.constant 0 : index
    %c2 = arith.constant 2 : index
    %c0_13 = arith.constant 0 : index
    %c0_14 = arith.constant 0 : index
    %17 = vector.load %arg2[%c0_12, %c2, %c0_13, %c0_14] : memref<3x3x3x128xf32, #tpu.memory_space<vmem>>, vector<1x1x3x128xf32>
    %18 = vector.shape_cast %17 : vector<1x1x3x128xf32> to vector<3x128xf32>
    %cst_15 = arith.constant dense<0.000000e+00> : vector<256x128xf32>
    %19 = tpu.matmul %16, %18, %cst_15 {dimension_numbers = #tpu.dot_dimension_numbers<[1], [0], [0], [1], [0, 0, 1, 1], [], []>} : vector<256x3xf32>, vector<3x128xf32>, vector<256x128xf32> -> vector<256x128xf32>
    %20 = arith.addf %14, %19 : vector<256x128xf32>
    %21 = vector.extract_strided_slice %1 {offsets = [1, 0, 0], sizes = [16, 16, 3], strides = [1, 1, 1]} : vector<18x18x3xf32> to vector<16x16x3xf32>
    %22 = vector.shape_cast %21 : vector<16x16x3xf32> to vector<256x3xf32>
    %c1_16 = arith.constant 1 : index
    %c0_17 = arith.constant 0 : index
    %c0_18 = arith.constant 0 : index
    %c0_19 = arith.constant 0 : index
    %23 = vector.load %arg2[%c1_16, %c0_17, %c0_18, %c0_19] : memref<3x3x3x128xf32, #tpu.memory_space<vmem>>, vector<1x1x3x128xf32>
    %24 = vector.shape_cast %23 : vector<1x1x3x128xf32> to vector<3x128xf32>
    %cst_20 = arith.constant dense<0.000000e+00> : vector<256x128xf32>
    %25 = tpu.matmul %22, %24, %cst_20 {dimension_numbers = #tpu.dot_dimension_numbers<[1], [0], [0], [1], [0, 0, 1, 1], [], []>} : vector<256x3xf32>, vector<3x128xf32>, vector<256x128xf32> -> vector<256x128xf32>
    %26 = arith.addf %20, %25 : vector<256x128xf32>
    %27 = vector.extract_strided_slice %1 {offsets = [1, 1, 0], sizes = [16, 16, 3], strides = [1, 1, 1]} : vector<18x18x3xf32> to vector<16x16x3xf32>
    %28 = vector.shape_cast %27 : vector<16x16x3xf32> to vector<256x3xf32>
    %c1_21 = arith.constant 1 : index
    %c1_22 = arith.constant 1 : index
    %c0_23 = arith.constant 0 : index
    %c0_24 = arith.constant 0 : index
    %29 = vector.load %arg2[%c1_21, %c1_22, %c0_23, %c0_24] : memref<3x3x3x128xf32, #tpu.memory_space<vmem>>, vector<1x1x3x128xf32>
    %30 = vector.shape_cast %29 : vector<1x1x3x128xf32> to vector<3x128xf32>
    %cst_25 = arith.constant dense<0.000000e+00> : vector<256x128xf32>
    %31 = tpu.matmul %28, %30, %cst_25 {dimension_numbers = #tpu.dot_dimension_numbers<[1], [0], [0], [1], [0, 0, 1, 1], [], []>} : vector<256x3xf32>, vector<3x128xf32>, vector<256x128xf32> -> vector<256x128xf32>
    %32 = arith.addf %26, %31 : vector<256x128xf32>
    %33 = vector.extract_strided_slice %1 {offsets = [1, 2, 0], sizes = [16, 16, 3], strides = [1, 1, 1]} : vector<18x18x3xf32> to vector<16x16x3xf32>
    %34 = vector.shape_cast %33 : vector<16x16x3xf32> to vector<256x3xf32>
    %c1_26 = arith.constant 1 : index
    %c2_27 = arith.constant 2 : index
    %c0_28 = arith.constant 0 : index
    %c0_29 = arith.constant 0 : index
    %35 = vector.load %arg2[%c1_26, %c2_27, %c0_28, %c0_29] : memref<3x3x3x128xf32, #tpu.memory_space<vmem>>, vector<1x1x3x128xf32>
    %36 = vector.shape_cast %35 : vector<1x1x3x128xf32> to vector<3x128xf32>
    %cst_30 = arith.constant dense<0.000000e+00> : vector<256x128xf32>
    %37 = tpu.matmul %34, %36, %cst_30 {dimension_numbers = #tpu.dot_dimension_numbers<[1], [0], [0], [1], [0, 0, 1, 1], [], []>} : vector<256x3xf32>, vector<3x128xf32>, vector<256x128xf32> -> vector<256x128xf32>
    %38 = arith.addf %32, %37 : vector<256x128xf32>
    %39 = vector.extract_strided_slice %1 {offsets = [2, 0, 0], sizes = [16, 16, 3], strides = [1, 1, 1]} : vector<18x18x3xf32> to vector<16x16x3xf32>
    %40 = vector.shape_cast %39 : vector<16x16x3xf32> to vector<256x3xf32>
    %c2_31 = arith.constant 2 : index
    %c0_32 = arith.constant 0 : index
    %c0_33 = arith.constant 0 : index
    %c0_34 = arith.constant 0 : index
    %41 = vector.load %arg2[%c2_31, %c0_32, %c0_33, %c0_34] : memref<3x3x3x128xf32, #tpu.memory_space<vmem>>, vector<1x1x3x128xf32>
    %42 = vector.shape_cast %41 : vector<1x1x3x128xf32> to vector<3x128xf32>
    %cst_35 = arith.constant dense<0.000000e+00> : vector<256x128xf32>
    %43 = tpu.matmul %40, %42, %cst_35 {dimension_numbers = #tpu.dot_dimension_numbers<[1], [0], [0], [1], [0, 0, 1, 1], [], []>} : vector<256x3xf32>, vector<3x128xf32>, vector<256x128xf32> -> vector<256x128xf32>
    %44 = arith.addf %38, %43 : vector<256x128xf32>
    %45 = vector.extract_strided_slice %1 {offsets = [2, 1, 0], sizes = [16, 16, 3], strides = [1, 1, 1]} : vector<18x18x3xf32> to vector<16x16x3xf32>
    %46 = vector.shape_cast %45 : vector<16x16x3xf32> to vector<256x3xf32>
    %c2_36 = arith.constant 2 : index
    %c1_37 = arith.constant 1 : index
    %c0_38 = arith.constant 0 : index
    %c0_39 = arith.constant 0 : index
    %47 = vector.load %arg2[%c2_36, %c1_37, %c0_38, %c0_39] : memref<3x3x3x128xf32, #tpu.memory_space<vmem>>, vector<1x1x3x128xf32>
    %48 = vector.shape_cast %47 : vector<1x1x3x128xf32> to vector<3x128xf32>
    %cst_40 = arith.constant dense<0.000000e+00> : vector<256x128xf32>
    %49 = tpu.matmul %46, %48, %cst_40 {dimension_numbers = #tpu.dot_dimension_numbers<[1], [0], [0], [1], [0, 0, 1, 1], [], []>} : vector<256x3xf32>, vector<3x128xf32>, vector<256x128xf32> -> vector<256x128xf32>
    %50 = arith.addf %44, %49 : vector<256x128xf32>
    %51 = vector.extract_strided_slice %1 {offsets = [2, 2, 0], sizes = [16, 16, 3], strides = [1, 1, 1]} : vector<18x18x3xf32> to vector<16x16x3xf32>
    %52 = vector.shape_cast %51 : vector<16x16x3xf32> to vector<256x3xf32>
    %c2_41 = arith.constant 2 : index
    %c2_42 = arith.constant 2 : index
    %c0_43 = arith.constant 0 : index
    %c0_44 = arith.constant 0 : index
    %53 = vector.load %arg2[%c2_41, %c2_42, %c0_43, %c0_44] : memref<3x3x3x128xf32, #tpu.memory_space<vmem>>, vector<1x1x3x128xf32>
    %54 = vector.shape_cast %53 : vector<1x1x3x128xf32> to vector<3x128xf32>
    %cst_45 = arith.constant dense<0.000000e+00> : vector<256x128xf32>
    %55 = tpu.matmul %52, %54, %cst_45 {dimension_numbers = #tpu.dot_dimension_numbers<[1], [0], [0], [1], [0, 0, 1, 1], [], []>} : vector<256x3xf32>, vector<3x128xf32>, vector<256x128xf32> -> vector<256x128xf32>
    %56 = arith.addf %50, %55 : vector<256x128xf32>
    %c0_46 = arith.constant 0 : index
    %c0_47 = arith.constant 0 : index
    %57 = vector.load %arg3[%c0_46, %c0_47] : memref<1x128xf32, #tpu.memory_space<vmem>>, vector<1x128xf32>
    %58 = vector.broadcast %57 : vector<1x128xf32> to vector<256x128xf32>
    %59 = arith.addf %56, %58 : vector<256x128xf32>
    %cst_48 = arith.constant 0.000000e+00 : f32
    %60 = vector.broadcast %cst_48 : f32 to vector<256x128xf32>
    %61 = arith.maximumf %59, %60 : vector<256x128xf32>
    %62 = vector.shape_cast %61 : vector<256x128xf32> to vector<1x16x16x128xf32>
    %63 = arith.truncf %62 : vector<1x16x16x128xf32> to vector<1x16x16x128xbf16>
    %c0_49 = arith.constant 0 : index
    %c0_50 = arith.constant 0 : index
    %c0_51 = arith.constant 0 : index
    %c0_52 = arith.constant 0 : index
    %64 = vector.load %arg4[%c0_49, %c0_50, %c0_51, %c0_52] : memref<1x16x16x128xbf16, #tpu.memory_space<vmem>>, vector<1x16x16x128xbf16>
    tpu.vector_store %arg4[%c0_49, %c0_50, %c0_51, %c0_52], %63 {strides = array<i32>} : memref<1x16x16x128xbf16, #tpu.memory_space<vmem>>, vector<1x16x16x128xbf16>,
    return
  }
  func.func @transform_0(%arg0: i32) -> (i32, i32, i32, i32) {
    %c0_i32 = arith.constant 0 : i32
    %c0_i32_0 = arith.constant 0 : i32
    %c0_i32_1 = arith.constant 0 : i32
    %c0_i32_2 = arith.constant 0 : i32
    return %arg0, %c0_i32, %c0_i32_0, %c0_i32_1 : i32, i32, i32, i32
  }
  func.func @transform_1(%arg0: i32) -> (i32, i32, i32, i32) {
    %c0_i32 = arith.constant 0 : i32
    %c0_i32_0 = arith.constant 0 : i32
    %c0_i32_1 = arith.constant 0 : i32
    %c0_i32_2 = arith.constant 0 : i32
    %c0_i32_3 = arith.constant 0 : i32
    return %c0_i32, %c0_i32_0, %c0_i32_1, %c0_i32_2 : i32, i32, i32, i32
  }
  func.func @transform_2(%arg0: i32) -> (i32, i32) {
    %c0_i32 = arith.constant 0 : i32
    %c0_i32_0 = arith.constant 0 : i32
    %c0_i32_1 = arith.constant 0 : i32
    return %c0_i32, %c0_i32_0 : i32, i32
  }
  func.func @transform_3(%arg0: i32) -> (i32, i32, i32, i32) {
    %c0_i32 = arith.constant 0 : i32
    %c0_i32_0 = arith.constant 0 : i32
    %c0_i32_1 = arith.constant 0 : i32
    %c0_i32_2 = arith.constant 0 : i32
    return %arg0, %c0_i32, %c0_i32_0, %c0_i32_1 : i32, i32, i32, i32
  }
}

</mosaic_0001>

<bundles_post_ra>
// kernel: tpu_custom_call.1
= control target key start
LH: loop header
LB: loop body
LE: loop exit
PB: predicated region body
PF: predicated region fallthrough
CT: control target
= control target key end

     0   :  { %8 = vsyncpa [#allocation3], 0  ;;  %s6370_s0 = inlined_call_operand.vmem [shape: f32[2,18,18,3], index: 0, kind: input, shape index: {}]   ;;  %s6371_s1 = inlined_call_operand.vmem [shape: f32[3,3,3,128], index: 1, kind: input, shape index: {}]   ;;  %s6372_s2 = inlined_call_operand.vmem [shape: f32[1,128], index: 2, kind: input, shape index: {}]   ;;  %s6373_s3 = inlined_call_operand.hbm [shape: bf16[2,16,16,128], index: 3, kind: output, shape index: {}]  }
   0x1   :  { %10 = vsyncpa [#allocation3 + $0x1], 0  ;;  %s4630_s12 = smov 0   ;;  %s4632_s13 = smov 0  }
   0x2   :  { %s4634_s14 = smov 0   ;;  %s4636_s15 = smov 0  }
   0x3 LB: > { %s4651_s16 = sadd.s32 4294967295, %s4605_s15   ;;  %s3277_s17 = sadd.s32 4294967294, %s4605_s15   ;;  %s4605_s15 = sphi %s4636_s15, %s6673_s15   ;;  %s4601_s14 = sphi %s4634_s14, %s6672_s14   ;;  %s4597_s13 = sphi %s4632_s13, %s6671_s13   ;;  %s4593_s12 = sphi %s4630_s12, %s6670_s12  }
   0x4   : > { %s4655_s18 = sadd.s32 1, %s4605_s15   ;;  %s91_s19 = sadd.s32 1, %s4601_s14 }
   0x5   : > { %s88_s20 = ssub.s32 %s4605_s15, %s4655_s18  ;;  %p101_p0 = scmp.ne.s32.totalorder %s4601_s14, %s4597_s13 }
   0x6   : > { %p89_p1 = scmp.eq.s32.totalorder %s88_s20, 0  ;;  %p102_p2 = scmp.eq.s32.totalorder %s4651_s16, 1 }
   0x7   : > { %p107_p3 = scmp.ne.s32.totalorder %s4597_s13, %s4593_s12  ;;  %p108_p4 = scmp.eq.s32.totalorder %s3277_s17, 1 }
   0x8   : > { %s4666_s21 = scalar_select %p89_p1, %s4601_s14, %s91_s19  }
   0x9   : > { %p4668_p5 = por %p102_p2, %p101_p0  ;;  %p4672_p6 = por %p108_p4, %p107_p3 }
   0xa   : > { %p3280_p7 = scmp.ge.s32.totalorder %s4605_s15, 1  ;;  %p140_p8 = scmp.lt.s32.totalorder %s4605_s15, 3 }
   0xc   : > { %p141_p9 = pnand %p3280_p7, %p140_p8 }
   0xe   : > { %144 = sbr.rel (%p141_p9) target bundleno = 535 (0x217), region = 32 }
  0x13   : > { %v3283_v0 = vld [vmem:[%s6371_s1 + $0x4] sm:$0x7]  ;;  %vm420_vm0 = vcmask 1042432   ;;  %p164_p10 = scmp.lt.s32.totalorder %s4651_s16, 1  ;;  %v223_v1 = vld [vmem:[%s6371_s1] sm:$0x7] }
  0x14   : > { %4501 = vmatprep.subr.msk.mxu1 %vm420_vm0, %v3283_v0  ;;  %4051 = vmatprep.subr.msk.mxu0 %vm420_vm0, %v3283_v0  ;;  %v3350_v2 = vld [vmem:[%s6371_s1 + $0x8] sm:$0x7]  ;;  %vm272_vm1 = vcmask 1046528   ;;  %vm355_vm2 = vcmask 23552   ;;  %v4741_v21 = vld [vmem:[%s6371_s1 + $0xc] sm:$0x7] }
  0x15   : > { %4502 = vmatpush3.msk.msra.mxu1 %vm420_vm0, %v3283_v0  ;;  %4052 = vmatpush3.msk.msra.mxu0 %vm420_vm0, %v3283_v0  ;;  %s165_s30 = scalar_select %p164_p10, %s4651_s16, 1  ;;  %v4759_v28 = vld [vmem:[%s6371_s1 + $0x10] sm:$0x7]  ;;  %vm941_vm3 = vcmask 1045504  }
  0x16   : > { %4101 = vmatprep.subr.msk.mxu1 %vm420_vm0, %v223_v1  ;;  %4151 = vmatprep.subr.msk.mxu0 %vm420_vm0, %v3350_v2  ;;  %s4607_s19 = smov [#allocation2]  }
  0x17   : > { %s4503_s4 = smul.u32 432, %s165_s30  ;;  %s4549_s20 = sshll.u32 %s4607_s19, 4  ;;  %s4550_s20 = int_to_ptr.vmem [resolvable:$false] %s4549_s20 }
  0x18   : > { %s4551_s24 = scalar_lea.vmem %s4550_s20, 4096 }
  0x19   : > { %s4698_s7 = scalar_lea.vmem %s6370_s0, %s4503_s4  ;;  %s161_s4 = sand.u32 1, %s4597_s13  }
  0x1a   : > { %v4701_v3 = vld [vmem:[%s4698_s7] sm:$0xff]  ;;  %v4704_v4 = vld [vmem:[%s4698_s7 + $0x8] sm:$0xff]  ;;  %v4716_v10 = vld [vmem:[%s4698_s7 + $0x10] sm:$0x3]  ;;  %s3281_s5 = sshll.u32 %s161_s4, 7  ;;  %s6330_s17 = scalar_lea.sflag [#allocation3], %s161_s4 }
  0x1b   : > { %v4707_v5 = vld [vmem:[%s4698_s7 + $0xc0] sm:$0xff]  ;;  %v273_v6 = vrot.slane %v4701_v3, 1  ;;  %v274_v7 = vrot.slane %v4704_v4, 1  ;;  %v4712_v8 = vld [vmem:[%s4698_s7 + $0xc8] sm:$0xff]  ;;  %v276_v12 = vrot.slane %v4716_v10, 1  ;;  %v4724_v14 = vld [vmem:[%s4698_s7 + $0x18] sm:$0xff] }
  0x1c   : > { %v313_v9 = vrot.slane %v4707_v5, 1  ;;  %v314_v11 = vrot.slane %v4712_v8, 1  ;;  %v4721_v13 = vld [vmem:[%s4698_s7 + $0xd0] sm:$0x3]  ;;  %v4729_v17 = vld [vmem:[%s4698_s7 + $0x20] sm:$0xff]  ;;  %v278_v18 = vrot.slane %v4724_v14, 1 }
  0x1d   : > { %v275_v15 = vsel %vm272_vm1, %v273_v6, %v274_v7  ;;  %v316_v16 = vrot.slane %v4721_v13, 1  ;;  %v4733_v19 = vld [vmem:[%s4698_s7 + $0xd8] sm:$0xff]  ;;  %v4736_v20 = vld [vmem:[%s4698_s7 + $0xe0] sm:$0xff]  ;;  %v277_v23 = vsel %vm272_vm1, %v274_v7, %v276_v12  ;;  %v279_v24 = vrot.slane %v4729_v17, 1  ;;  %v4751_v26 = vld [vmem:[%s4698_s7 + $0x28] sm:$0x3] }
  0x1e   : > { %4053 = vmatprep.mubr.msk.f32.mxu0 %vm355_vm2, %v275_v15  ;;  %v4745_v22 = vsel %vm272_vm1, %v313_v9, %v314_v11  ;;  %v318_v25 = vrot.slane %v4733_v19, 1  ;;  %v4754_v27 = vld [vmem:[%s4698_s7 + $0xe8] sm:$0x3]  ;;  %v319_v30 = vrot.slane %v4736_v20, 1  ;;  %v281_v31 = vrot.slane %v4751_v26, 1  ;;  %v4771_v33 = vld [vmem:[%s4698_s7 + $0x30] sm:$0xff] }
  0x1f   : > { %6458 = vst [vmem:[#allocation5_spill] sm:$0xff] %v4745_v22  ;;  %4077 = vmatprep.mubr.msk.f32.mxu1 %vm355_vm2, %v4745_v22  ;;  %4054 = vmatmul.mubr.msk.f32.vlgmr.msra.gmra.mxu0 %vm355_vm2, %v277_v23  ;;  %v4765_v29 = vsel %vm272_vm1, %v314_v11, %v316_v16  ;;  %v321_v32 = vrot.slane %v4754_v27, 1  ;;  %v4774_v34 = vld [vmem:[%s4698_s7 + $0x38] sm:$0xff]  ;;  %v4777_v35 = vld [vmem:[%s4698_s7 + $0xf0] sm:$0xff]  ;;  %v4783_v36 = vsel %vm272_vm1, %v278_v18, %v279_v24  ;;  %v283_v37 = vrot.slane %v4771_v33, 1  ;;  %v4811_v47 = vld [vmem:[%s4698_s7 + $0x48] sm:$0xff] }
  0x20   : > { %6459 = vst [vmem:[#allocation6_spill] sm:$0xff] %v4765_v29  ;;  %4078 = vmatmul.mubr.msk.f32.vlgmr.msra.gmra.mxu1 %vm355_vm2, %v4765_v29  ;;  %4152 = vmatpush3.msk.msra.mxu0 %vm420_vm0, %v3350_v2  ;;  %6460 = vst [vmem:[#allocation7_spill] sm:$0xff] %v4783_v36  ;;  %v284_v38 = vrot.slane %v4774_v34, 1  ;;  %v4788_v39 = vld [vmem:[%s4698_s7 + $0xf8] sm:$0xff]  ;;  %v323_v40 = vrot.slane %v4777_v35, 1  ;;  %v4798_v42 = vsel %vm272_vm1, %v318_v25, %v319_v30  ;;  %v4814_v48 = vld [vmem:[%s4698_s7 + $0x50] sm:$0xff] }
  0x21   : > { %v4792_v41 = vld [vmem:[%s4698_s7 + $0x40] sm:$0x3]  ;;  %4102 = vmatpush3.msk.msra.mxu1 %vm420_vm0, %v223_v1  ;;  %4056 = vmatprep.mubr.msk.f32.mxu0 %vm355_vm2, %v4783_v36  ;;  %6461 = vst [vmem:[#allocation8_spill] sm:$0xff] %v4798_v42  ;;  %v4801_v43 = vsel %vm272_vm1, %v279_v24, %v281_v31  ;;  %v4804_v44 = vsel %vm272_vm1, %v319_v30, %v321_v32  ;;  %v324_v45 = vrot.slane %v4788_v39, 1  ;;  %v288_v52 = vrot.slane %v4811_v47, 1  ;;  %v4825_v53 = vld [vmem:[%s4698_s7 + $0x108] sm:$0xff] }
  0x22   : > { %6462 = vst [vmem:[#allocation9_spill] sm:$0xff] %v4801_v43  ;;  %6463 = vst [vmem:[#allocation10_spill] sm:$0xff] %v4804_v44  ;;  %v4808_v46 = vld [vmem:[%s4698_s7 + $0x100] sm:$0x3]  ;;  %4080 = vmatprep.mubr.msk.f32.mxu1 %vm355_vm2, %v4798_v42  ;;  %v4819_v49 = vsel %vm272_vm1, %v283_v37, %v284_v38  ;;  %v286_v50 = vrot.slane %v4792_v41, 1  ;;  %v4828_v54 = vld [vmem:[%s4698_s7 + $0x110] sm:$0xff]  ;;  %4201 = vmatprep.subr.msk.mxu1 %vm420_vm0, %v4741_v21 }
  0x23   : > { %6464 = vst [vmem:[#allocation11_spill] sm:$0xff] %v4819_v49  ;;  %v326_v51 = vrot.slane %v4808_v46, 1  ;;  %v4831_v55 = vld [vmem:[%s4698_s7 + $0x60] sm:$0xff]  ;;  %4057 = vmatmul.mubr.msk.f32.gmra.mxu0 %vm355_vm2, %v4801_v43  ;;  %v4838_v56 = vsel %vm272_vm1, %v323_v40, %v324_v45  ;;  %v289_v57 = vrot.slane %v4814_v48, 1  ;;  %v328_v58 = vrot.slane %v4825_v53, 1  ;;  %v4847_v61 = vld [vmem:[%s4698_s7 + $0x68] sm:$0xff]  ;;  %4251 = vmatprep.subr.msk.mxu0 %vm420_vm0, %v4759_v28 }
  0x24   : > { %6465 = vst [vmem:[#allocation12_spill] sm:$0xff] %v4838_v56  ;;  %v329_v59 = vrot.slane %v4828_v54, 1  ;;  %v4844_v60 = vld [vmem:[%s4698_s7 + $0x58] sm:$0x3]  ;;  %4081 = vmatmul.mubr.msk.f32.gmra.mxu1 %vm355_vm2, %v4804_v44  ;;  %4059 = vmatprep.mubr.msk.f32.mxu0 %vm355_vm2, %v4819_v49  ;;  %v4856_v62 = vsel %vm272_vm1, %v284_v38, %v286_v50  ;;  %v293_v1 = vrot.slane %v4831_v55, 1  ;;  %v4864_v2 = vld [vmem:[%s4698_s7 + $0x120] sm:$0xff] }
  0x25   : > { %6466 = vst [vmem:[#allocation13_spill] sm:$0xff] %v4856_v62  ;;  %v291_v63 = vrot.slane %v4844_v60, 1  ;;  %v4860_v0 = vld [vmem:[%s4698_s7 + $0x118] sm:$0x3]  ;;  %v4867_v6 = vld [vmem:[%s4698_s7 + $0x128] sm:$0xff]  ;;  %4083 = vmatprep.mubr.msk.f32.mxu1 %vm355_vm2, %v4838_v56  ;;  %v4872_v7 = vsel %vm272_vm1, %v324_v45, %v326_v51  ;;  %v4875_v9 = vsel %vm272_vm1, %v288_v52, %v289_v57  ;;  %v294_v12 = vrot.slane %v4847_v61, 1 }
  0x26   : > { %6467 = vst [vmem:[#allocation14_spill] sm:$0xff] %v4872_v7  ;;  %6468 = vst [vmem:[#allocation15_spill] sm:$0xff] %v4875_v9  ;;  %v331_v11 = vrot.slane %v4860_v0, 1  ;;  %v4880_v15 = vld [vmem:[%s4698_s7 + $0x70] sm:$0x3]  ;;  %v4886_v18 = vsel %vm272_vm1, %v328_v58, %v329_v59  ;;  %v333_v23 = vrot.slane %v4864_v2, 1 }
  0x27   : > { %v4883_v16 = vld [vmem:[%s4698_s7 + $0x130] sm:$0x3]  ;;  %6469 = vst [vmem:[#allocation16_spill] sm:$0xff] %v4886_v18  ;;  %v334_v24 = vrot.slane %v4867_v6, 1  ;;  %v4891_v25 = vld [vmem:[%s4698_s7 + $0x78] sm:$0xff]  ;;  %v4894_v30 = vld [vmem:[%s4698_s7 + $0x80] sm:$0xff]  ;;  %4060 = vmatmul.mubr.msk.f32.gmra.mxu0 %vm355_vm2, %v4856_v62  ;;  %v4909_v37 = vsel %vm272_vm1, %v289_v57, %v291_v63  ;;  %v4919_v50 = vsel %vm272_vm1, %v293_v1, %v294_v12 }
  0x28   : > { %v4899_v31 = vld [vmem:[%s4698_s7 + $0x138] sm:$0xff]  ;;  %v4902_v32 = vld [vmem:[%s4698_s7 + $0x140] sm:$0xff]  ;;  %4084 = vmatmul.mubr.msk.f32.gmra.mxu1 %vm355_vm2, %v4872_v7  ;;  %4062 = vmatprep.mubr.msk.f32.mxu0 %vm355_vm2, %v4875_v9  ;;  %6470 = vst [vmem:[#allocation17_spill] sm:$0xff] %v4909_v37  ;;  %v296_v38 = vrot.slane %v4880_v15, 1  ;;  %v336_v40 = vrot.slane %v4883_v16, 1  ;;  %v4916_v45 = vsel %vm272_vm1, %v329_v59, %v331_v11  ;;  %6472 = vst [vmem:[#allocation19_spill] sm:$0xff] %v4919_v50 }
  0x29   : > { %4086 = vmatprep.mubr.msk.f32.mxu1 %vm355_vm2, %v4886_v18  ;;  %6471 = vst [vmem:[#allocation18_spill] sm:$0xff] %v4916_v45  ;;  %v298_v51 = vrot.slane %v4891_v25, 1  ;;  %v299_v52 = vrot.slane %v4894_v30, 1  ;;  %v4924_v57 = vld [vmem:[%s4698_s7 + $0x88] sm:$0x3]  ;;  %v4930_v63 = vsel %vm272_vm1, %v333_v23, %v334_v24  ;;  %v338_v7 = vrot.slane %v4899_v31, 1 }
  0x2a   : > { %v4927_v58 = vld [vmem:[%s4698_s7 + $0x148] sm:$0x3]  ;;  %6473 = vst [vmem:[#allocation20_spill] sm:$0xff] %v4930_v63  ;;  %v339_v18 = vrot.slane %v4902_v32, 1  ;;  %v4935_v59 = vld [vmem:[%s4698_s7 + $0x90] sm:$0xff]  ;;  %v4938_v1 = vld [vmem:[%s4698_s7 + $0x98] sm:$0xff]  ;;  %v4953_v23 = vsel %vm272_vm1, %v294_v12, %v296_v38  ;;  %v4960_v29 = vsel %vm272_vm1, %v334_v24, %v336_v40 }
  0x2b   : > { %4063 = vmatmul.mubr.msk.f32.gmra.mxu0 %vm355_vm2, %v4909_v37  ;;  %v4943_v11 = vld [vmem:[%s4698_s7 + $0x150] sm:$0xff]  ;;  %v4946_v56 = vld [vmem:[%s4698_s7 + $0x158] sm:$0xff]  ;;  %6475 = vst [vmem:[#allocation22_spill] sm:$0xff] %v4953_v23  ;;  %v301_v44 = vrot.slane %v4924_v57, 1  ;;  %v341_v42 = vrot.slane %v4927_v58, 1  ;;  %6476 = vst [vmem:[#allocation23_spill] sm:$0xff] %v4960_v29 }
  0x2c   : > { %6474 = vst [vmem:[#allocation21_spill] sm:$0xff] %v4946_v56  ;;  %4087 = vmatmul.mubr.msk.f32.gmra.mxu1 %vm355_vm2, %v4916_v45  ;;  %4065 = vmatprep.mubr.msk.f32.mxu0 %vm355_vm2, %v4919_v50  ;;  %v4963_v45 = vsel %vm272_vm1, %v298_v51, %v299_v52  ;;  %v303_v22 = vrot.slane %v4935_v59, 1  ;;  %v304_v12 = vrot.slane %v4938_v1, 1  ;;  %v4968_v38 = vld [vmem:[%s4698_s7 + $0xa0] sm:$0x3]  ;;  %v4971_v50 = vsel %vm272_vm1, %v338_v7, %v339_v18  ;;  %v4979_v24 = vld [vmem:[%s4698_s7 + $0xa8] sm:$0xff] }
  0x2d   : > { %4089 = vmatprep.mubr.msk.f32.mxu1 %vm355_vm2, %v4930_v63  ;;  %6477 = vst [vmem:[#allocation24_spill] sm:$0xff] %v4963_v45  ;;  %6478 = vst [vmem:[#allocation25_spill] sm:$0xff] %v4971_v50  ;;  %v343_v37 = vrot.slane %v4943_v11, 1  ;;  %v344_v9 = vrot.slane %v4946_v56, 1  ;;  %v4976_v63 = vld [vmem:[%s4698_s7 + $0x160] sm:$0x3]  ;;  %v4997_v7 = vsel %vm272_vm1, %v299_v52, %v301_v44  ;;  %v5000_v49 = vsel %vm272_vm1, %v339_v18, %v341_v42 }
  0x2e   : > { %v4982_v40 = vld [vmem:[%s4698_s7 + $0xb0] sm:$0xff]  ;;  %v4987_v51 = vld [vmem:[%s4698_s7 + $0x168] sm:$0xff]  ;;  %6480 = vst [vmem:[#allocation27_spill] sm:$0xff] %v4997_v7  ;;  %6481 = vst [vmem:[#allocation28_spill] sm:$0xff] %v5000_v49  ;;  %v306_v43 = vrot.slane %v4968_v38, 1  ;;  %v346_v36 = vrot.slane %v4976_v63, 1 }
  0x2f   : > { %4066 = vmatmul.mubr.msk.f32.gmra.mxu0 %vm355_vm2, %v4953_v23  ;;  %v4990_v62 = vld [vmem:[%s4698_s7 + $0x170] sm:$0xff]  ;;  %v5006_v23 = vsel %vm272_vm1, %v303_v22, %v304_v12  ;;  %v5012_v56 = vld [vmem:[%s4698_s7 + $0xb8] sm:$0x3]  ;;  %v5015_v44 = vsel %vm272_vm1, %v343_v37, %v344_v9  ;;  %v348_v42 = vrot.slane %v4987_v51, 1  ;;  %s6205_s6 = scalar_lea.vmem [#allocation2], %s3281_s5 }
  0x30   : > { %6479 = vst [vmem:[#allocation26_spill] sm:$0xff] %v4990_v62  ;;  %4090 = vmatmul.mubr.msk.f32.gmra.mxu1 %vm355_vm2, %v4960_v29  ;;  %4068 = vmatprep.mubr.msk.f32.mxu0 %vm355_vm2, %v4963_v45  ;;  %6482 = vst [vmem:[#allocation29_spill] sm:$0xff] %v5006_v23  ;;  %v308_v29 = vrot.slane %v4979_v24, 1  ;;  %v309_v45 = vrot.slane %v4982_v40, 1  ;;  %v349_v18 = vrot.slane %v4990_v62, 1  ;;  %v5029_v22 = vsel %vm272_vm1, %v304_v12, %v306_v43  ;;  %s3215_s8 = sshll.u32 %s6205_s6, 4  ;;  %s6325_s8 = int_to_ptr.vmem [resolvable:$true] %s3215_s8 }
  0x31   : > { %4092 = vmatprep.mubr.msk.f32.mxu1 %vm355_vm2, %v4971_v50  ;;  %6483 = vst [vmem:[#allocation30_spill] sm:$0xff] %v5015_v44  ;;  %v5020_v52 = vld [vmem:[%s4698_s7 + $0x178] sm:$0x3]  ;;  %6484 = vst [vmem:[#allocation31_spill] sm:$0xff] %v5029_v22  ;;  %v311_v37 = vrot.slane %v5012_v56, 1  ;;  %v942_v50 = vrot.slane %v4701_v3, 2  ;;  %v5036_v62 = vsel %vm272_vm1, %v344_v9, %v346_v36  ;;  %p4552_p0 = scmp.lt.s32.totalorder %s6325_s8, %s4550_s20 }
  0x32   : > { %6485 = vst [vmem:[#allocation32_spill] sm:$0xff] %v5036_v62  ;;  %v5044_v43 = vsel %vm272_vm1, %v348_v42, %v349_v18  ;;  %v945_v12 = vrot.slane %v4716_v10, 2  ;;  %v947_v10 = vrot.slane %v4724_v14, 2  ;;  %v948_v42 = vrot.slane %v4729_v17, 2 }
  0x33   : > { %4069 = vmatmul.mubr.msk.f32.gmra.mxu0 %vm355_vm2, %v4997_v7  ;;  %v5039_v7 = vsel %vm272_vm1, %v308_v29, %v309_v45  ;;  %6487 = vst [vmem:[#allocation34_spill] sm:$0xff] %v5044_v43  ;;  %v5054_v29 = vsel %vm272_vm1, %v309_v45, %v311_v37  ;;  %v950_v37 = vrot.slane %v4751_v26, 2  ;;  %v955_v26 = vrot.slane %v4792_v41, 2 }
  0x34   : > { %4093 = vmatmul.mubr.msk.f32.gmra.mxu1 %vm355_vm2, %v5000_v49  ;;  %4071 = vmatprep.mubr.msk.f32.mxu0 %vm355_vm2, %v5006_v23  ;;  %6486 = vst [vmem:[#allocation33_spill] sm:$0xff] %v5039_v7  ;;  %v351_v49 = vrot.slane %v5020_v52, 1  ;;  %v943_v23 = vrot.slane %v4704_v4, 2  ;;  %6488 = vst [vmem:[#allocation35_spill] sm:$0xff] %v5054_v29  ;;  %v960_v41 = vrot.slane %v4844_v60, 2 }
  0x35   : > { %4095 = vmatprep.mubr.msk.f32.mxu1 %vm355_vm2, %v5015_v44 }
  0x36   : > { %v5059_v36 = vsel %vm272_vm1, %v349_v18, %v351_v49  ;;  %v944_v9 = vsel %vm941_vm3, %v942_v50, %v943_v23  ;;  %v946_v45 = vsel %vm941_vm3, %v943_v23, %v945_v12  ;;  %v952_v49 = vrot.slane %v4771_v33, 2  ;;  %v5095_v23 = vld [vmem:[%s6371_s1 + $0x18] sm:$0x7] }
  0x37   : > { %4072 = vmatmul.mubr.msk.f32.gmra.mxu0 %vm355_vm2, %v5029_v22  ;;  %6489 = vst [vmem:[#allocation36_spill] sm:$0xff] %v5059_v36  ;;  %v953_v50 = vrot.slane %v4774_v34, 2  ;;  %v5077_v18 = vsel %vm941_vm3, %v947_v10, %v948_v42  ;;  %v958_v12 = vrot.slane %v4814_v48, 2 }
  0x38   : > { %4096 = vmatmul.mubr.msk.f32.gmra.mxu1 %vm355_vm2, %v5036_v62  ;;  %4074 = vmatprep.mubr.msk.f32.mxu0 %vm355_vm2, %v5039_v7 }
  0x39   : > { %4098 = vmatprep.mubr.msk.f32.mxu1 %vm355_vm2, %v5044_v43  ;;  %v5136_v60 = vsel %vm941_vm3, %v958_v12, %v960_v41  ;;  %v972_v41 = vrot.slane %v4935_v59, 2 }
  0x3b   : > { %4075 = vmatmul.mubr.msk.f32.gmra.mxu0 %vm355_vm2, %v5054_v29 }
  0x3c   : > { %4099 = vmatmul.mubr.msk.f32.gmra.mxu1 %vm355_vm2, %v5059_v36  ;;  %4153 = vmatprep.mubr.msk.f32.mxu0 %vm355_vm2, %v944_v9  ;;  %v5082_v9 = vld [vmem:[%s6371_s1 + $0x14] sm:$0x7] }
  0x3d   : > { %4103 = vmatprep.mubr.msk.f32.mxu1 %vm355_vm2, %v4701_v3  ;;  %v5089_v3 = vsel %vm941_vm3, %v948_v42, %v950_v37  ;;  %v962_v42 = vrot.slane %v4831_v55, 2  ;;  %v965_v37 = vrot.slane %v4880_v15, 2 }
  0x3f   : > { %4154 = vmatmul.mubr.msk.f32.vlgmr.msra.gmra.mxu0 %vm355_vm2, %v946_v45  ;;  %v963_v45 = vrot.slane %v4847_v61, 2 }
  0x40   : > { %4104 = vmatmul.mubr.msk.f32.vlgmr.msra.gmra.mxu1 %vm355_vm2, %v4704_v4  ;;  %4252 = vmatpush3.msk.msra.mxu0 %vm420_vm0, %v4759_v28  ;;  %v5102_v4 = vsel %vm941_vm3, %v952_v49, %v953_v50  ;;  %v957_v28 = vrot.slane %v4811_v47, 2 }
  0x41   : > { %4202 = vmatpush3.msk.msra.mxu1 %vm420_vm0, %v4741_v21  ;;  %4106 = vmatprep.mubr.msk.f32.mxu1 %vm355_vm2, %v4724_v14  ;;  %v5119_v21 = vsel %vm941_vm3, %v953_v50, %v955_v26  ;;  %v5142_v49 = vsel %vm941_vm3, %v962_v42, %v963_v45  ;;  %v967_v50 = vrot.slane %v4891_v25, 2  ;;  %v968_v26 = vrot.slane %v4894_v30, 2 }
  0x42   : > { %4156 = vmatprep.mubr.msk.f32.mxu0 %vm355_vm2, %v5077_v18  ;;  %4301 = vmatprep.subr.msk.mxu1 %vm420_vm0, %v5082_v9  ;;  %v5125_v10 = vsel %vm941_vm3, %v957_v28, %v958_v12  ;;  %v5153_v15 = vsel %vm941_vm3, %v963_v45, %v965_v37  ;;  %v970_v28 = vrot.slane %v4924_v57, 2  ;;  %v973_v42 = vrot.slane %v4938_v1, 2 }
  0x43   : > { %4157 = vmatmul.mubr.msk.f32.gmra.mxu0 %vm355_vm2, %v5089_v3  ;;  %4351 = vmatprep.subr.msk.mxu0 %vm420_vm0, %v5095_v23  ;;  %6490 = vst [vmem:[#allocation37_spill] sm:$0xff] %v5153_v15  ;;  %v5159_v12 = vsel %vm941_vm3, %v967_v50, %v968_v26  ;;  %v975_v45 = vrot.slane %v4968_v38, 2  ;;  %v977_v50 = vrot.slane %v4979_v24, 2 }
  0x44   : > { %4107 = vmatmul.mubr.msk.f32.gmra.mxu1 %vm355_vm2, %v4729_v17  ;;  %4159 = vmatprep.mubr.msk.f32.mxu0 %vm355_vm2, %v5102_v4  ;;  %v5170_v57 = vsel %vm941_vm3, %v968_v26, %v970_v28  ;;  %v5176_v37 = vsel %vm941_vm3, %v972_v41, %v973_v42  ;;  %v980_v26 = vrot.slane %v5012_v56, 2  ;;  %v982_v41 = vrot.slane %v4707_v5, 2 }
  0x45   : > { %4109 = vmatprep.mubr.msk.f32.mxu1 %vm355_vm2, %v4771_v33  ;;  %6491 = vst [vmem:[#allocation38_spill] sm:$0xff] %v5170_v57  ;;  %v5187_v38 = vsel %vm941_vm3, %v973_v42, %v975_v45  ;;  %v985_v42 = vrot.slane %v4721_v13, 2 }
  0x46   : > { %6492 = vst [vmem:[#allocation39_spill] sm:$0xff] %v5187_v38 }
  0x47   : > { %4160 = vmatmul.mubr.msk.f32.gmra.mxu0 %vm355_vm2, %v5119_v21 }
  0x48   : > { %4110 = vmatmul.mubr.msk.f32.gmra.mxu1 %vm355_vm2, %v4774_v34  ;;  %4162 = vmatprep.mubr.msk.f32.mxu0 %vm355_vm2, %v5125_v10 }
  0x49   : > { %4112 = vmatprep.mubr.msk.f32.mxu1 %vm355_vm2, %v4811_v47 }
  0x4b   : > { %4163 = vmatmul.mubr.msk.f32.gmra.mxu0 %vm355_vm2, %v5136_v60 }
  0x4c   : > { %4113 = vmatmul.mubr.msk.f32.gmra.mxu1 %vm355_vm2, %v4814_v48  ;;  %4165 = vmatprep.mubr.msk.f32.mxu0 %vm355_vm2, %v5142_v49 }
  0x4d   : > { %4115 = vmatprep.mubr.msk.f32.mxu1 %vm355_vm2, %v4831_v55 }
  0x4f   : > { %4166 = vmatmul.mubr.msk.f32.gmra.mxu0 %vm355_vm2, %v5153_v15  ;;  %v978_v15 = vrot.slane %v4982_v40, 2 }
  0x50   : > { %4116 = vmatmul.mubr.msk.f32.gmra.mxu1 %vm355_vm2, %v4847_v61  ;;  %4168 = vmatprep.mubr.msk.f32.mxu0 %vm355_vm2, %v5159_v12 }
  0x51   : > { %4118 = vmatprep.mubr.msk.f32.mxu1 %vm355_vm2, %v4891_v25  ;;  %v5193_v28 = vsel %vm941_vm3, %v977_v50, %v978_v15  ;;  %v5204_v56 = vsel %vm941_vm3, %v978_v15, %v980_v26  ;;  %v987_v50 = vrot.slane %v4733_v19, 2  ;;  %v990_v15 = vrot.slane %v4754_v27, 2 }
  0x52   : > { %6493 = vst [vmem:[#allocation40_spill] sm:$0xff] %v5204_v56 }
  0x53   : > { %4169 = vmatmul.mubr.msk.f32.gmra.mxu0 %vm355_vm2, %v5170_v57  ;;  %v983_v57 = vrot.slane %v4712_v8, 2 }
  0x54   : > { %4119 = vmatmul.mubr.msk.f32.gmra.mxu1 %vm355_vm2, %v4894_v30  ;;  %4171 = vmatprep.mubr.msk.f32.mxu0 %vm355_vm2, %v5176_v37 }
  0x55   : > { %4121 = vmatprep.mubr.msk.f32.mxu1 %vm355_vm2, %v4935_v59  ;;  %v5210_v45 = vsel %vm941_vm3, %v982_v41, %v983_v57  ;;  %v5221_v13 = vsel %vm941_vm3, %v983_v57, %v985_v42  ;;  %v992_v41 = vrot.slane %v4777_v35, 2  ;;  %v995_v57 = vrot.slane %v4808_v46, 2 }
  0x56   : > { %6494 = vst [vmem:[#allocation41_spill] sm:$0xff] %v5221_v13 }
  0x57   : > { %4172 = vmatmul.mubr.msk.f32.gmra.mxu0 %vm355_vm2, %v5187_v38  ;;  %v988_v38 = vrot.slane %v4736_v20, 2 }
  0x58   : > { %4122 = vmatmul.mubr.msk.f32.gmra.mxu1 %vm355_vm2, %v4938_v1  ;;  %4174 = vmatprep.mubr.msk.f32.mxu0 %vm355_vm2, %v5193_v28 }
  0x59   : > { %4124 = vmatprep.mubr.msk.f32.mxu1 %vm355_vm2, %v4979_v24  ;;  %v5227_v26 = vsel %vm941_vm3, %v987_v50, %v988_v38  ;;  %v5238_v27 = vsel %vm941_vm3, %v988_v38, %v990_v15  ;;  %v997_v50 = vrot.slane %v4825_v53, 2  ;;  %v1000_v38 = vrot.slane %v4860_v0, 2 }
  0x5a   : > { %6495 = vst [vmem:[#allocation42_spill] sm:$0xff] %v5238_v27 }
  0x5b   : > { %4175 = vmatmul.mubr.msk.f32.gmra.mxu0 %vm355_vm2, %v5204_v56  ;;  %v993_v56 = vrot.slane %v4788_v39, 2 }
  0x5c   : > { %4125 = vmatmul.mubr.msk.f32.gmra.mxu1 %vm355_vm2, %v4982_v40  ;;  %4177 = vmatprep.mubr.msk.f32.mxu0 %vm355_vm2, %v5210_v45 }
  0x5d   : > { %4127 = vmatprep.mubr.msk.f32.mxu1 %vm355_vm2, %v4707_v5  ;;  %v5244_v42 = vsel %vm941_vm3, %v992_v41, %v993_v56  ;;  %v5255_v46 = vsel %vm941_vm3, %v993_v56, %v995_v57  ;;  %v1002_v41 = vrot.slane %v4864_v2, 2  ;;  %v1005_v56 = vrot.slane %v4883_v16, 2 }
  0x5e   : > { %6496 = vst [vmem:[#allocation43_spill] sm:$0xff] %v5255_v46 }
  0x5f   : > { %4178 = vmatmul.mubr.msk.f32.gmra.mxu0 %vm355_vm2, %v5221_v13  ;;  %v998_v13 = vrot.slane %v4828_v54, 2 }
  0x60   : > { %4128 = vmatmul.mubr.msk.f32.gmra.mxu1 %vm355_vm2, %v4712_v8  ;;  %4180 = vmatprep.mubr.msk.f32.mxu0 %vm355_vm2, %v5227_v26 }
  0x61   : > { %4130 = vmatprep.mubr.msk.f32.mxu1 %vm355_vm2, %v4733_v19  ;;  %v5261_v15 = vsel %vm941_vm3, %v997_v50, %v998_v13  ;;  %v5272_v0 = vsel %vm941_vm3, %v998_v13, %v1000_v38  ;;  %v1007_v50 = vrot.slane %v4899_v31, 2  ;;  %v1010_v13 = vrot.slane %v4927_v58, 2 }
  0x62   : > { %6497 = vst [vmem:[#allocation44_spill] sm:$0xff] %v5261_v15  ;;  %6498 = vst [vmem:[#allocation45_spill] sm:$0xff] %v5272_v0 }
  0x63   : > { %4181 = vmatmul.mubr.msk.f32.gmra.mxu0 %vm355_vm2, %v5238_v27  ;;  %v1003_v27 = vrot.slane %v4867_v6, 2 }
  0x64   : > { %4131 = vmatmul.mubr.msk.f32.gmra.mxu1 %vm355_vm2, %v4736_v20  ;;  %4183 = vmatprep.mubr.msk.f32.mxu0 %vm355_vm2, %v5244_v42 }
  0x65   : > { %4133 = vmatprep.mubr.msk.f32.mxu1 %vm355_vm2, %v4777_v35  ;;  %v5278_v57 = vsel %vm941_vm3, %v1002_v41, %v1003_v27  ;;  %v5289_v16 = vsel %vm941_vm3, %v1003_v27, %v1005_v56  ;;  %v1012_v41 = vrot.slane %v4943_v11, 2  ;;  %v1015_v27 = vrot.slane %v4976_v63, 2 }
  0x66   : > { %6499 = vst [vmem:[#allocation46_spill] sm:$0xff] %v5278_v57  ;;  %6500 = vst [vmem:[#allocation47_spill] sm:$0xff] %v5289_v16 }
  0x67   : > { %4184 = vmatmul.mubr.msk.f32.gmra.mxu0 %vm355_vm2, %v5255_v46  ;;  %v1008_v46 = vrot.slane %v4902_v32, 2 }
  0x68   : > { %4134 = vmatmul.mubr.msk.f32.gmra.mxu1 %vm355_vm2, %v4788_v39  ;;  %4186 = vmatprep.mubr.msk.f32.mxu0 %vm355_vm2, %v5261_v15 }
  0x69   : > { %4136 = vmatprep.mubr.msk.f32.mxu1 %vm355_vm2, %v4825_v53  ;;  %v5295_v38 = vsel %vm941_vm3, %v1007_v50, %v1008_v46  ;;  %v5306_v58 = vsel %vm941_vm3, %v1008_v46, %v1010_v13  ;;  %v1017_v50 = vrot.slane %v4987_v51, 2  ;;  %v1020_v46 = vrot.slane %v5020_v52, 2  ;;  %v6504_v52 = vld [vmem:[#allocation7_spill] sm:$0xff] }
  0x6b   : > { %4187 = vmatmul.mubr.msk.f32.gmra.mxu0 %vm355_vm2, %v5272_v0  ;;  %v6501_v0 = vld [vmem:[#allocation21_spill] sm:$0xff] }
  0x6c   : > { %4137 = vmatmul.mubr.msk.f32.gmra.mxu1 %vm355_vm2, %v4828_v54  ;;  %4189 = vmatprep.mubr.msk.f32.mxu0 %vm355_vm2, %v5278_v57  ;;  %v1013_v15 = vrot.slane %v6501_v0, 2 }
  0x6d   : > { %4139 = vmatprep.mubr.msk.f32.mxu1 %vm355_vm2, %v4864_v2 }
  0x6e   : > { %v5312_v56 = vsel %vm941_vm3, %v1012_v41, %v1013_v15  ;;  %v5323_v63 = vsel %vm941_vm3, %v1013_v15, %v1015_v27  ;;  %v6505_v41 = vld [vmem:[#allocation9_spill] sm:$0xff] }
  0x6f   : > { %4190 = vmatmul.mubr.msk.f32.gmra.mxu0 %vm355_vm2, %v5289_v16  ;;  %v6502_v16 = vld [vmem:[#allocation26_spill] sm:$0xff]  ;;  %v5364_v27 = vld [vmem:[%s6371_s1 + $0x20] sm:$0x7] }
  0x70   : > { %4140 = vmatmul.mubr.msk.f32.gmra.mxu1 %vm355_vm2, %v4867_v6  ;;  %4192 = vmatprep.mubr.msk.f32.mxu0 %vm355_vm2, %v5295_v38  ;;  %v1018_v57 = vrot.slane %v6502_v16, 2 }
  0x71   : > { %4142 = vmatprep.mubr.msk.f32.mxu1 %vm355_vm2, %v4899_v31 }
  0x72   : > { %v5329_v13 = vsel %vm941_vm3, %v1017_v50, %v1018_v57  ;;  %v5338_v15 = vsel %vm941_vm3, %v1018_v57, %v1020_v46  ;;  %v5355_v57 = vld [vmem:[%s6371_s1 + $0x1c] sm:$0x7]  ;;  %v6510_v50 = vld [vmem:[#allocation19_spill] sm:$0xff]  ;;  %v6511_v46 = vld [vmem:[#allocation22_spill] sm:$0xff] }
  0x73   : > { %4193 = vmatmul.mubr.msk.f32.gmra.mxu0 %vm355_vm2, %v5306_v58  ;;  %6503 = vst [vmem:[#allocation21_spill] sm:$0xff] %v5338_v15 }
  0x74   : > { %4143 = vmatmul.mubr.msk.f32.gmra.mxu1 %vm355_vm2, %v4902_v32  ;;  %4195 = vmatprep.mubr.msk.f32.mxu0 %vm355_vm2, %v5312_v56 }
  0x75   : > { %4145 = vmatprep.mubr.msk.f32.mxu1 %vm355_vm2, %v4943_v11 }
  0x77   : > { %4196 = vmatmul.mubr.msk.f32.gmra.mxu0 %vm355_vm2, %v5323_v63 }
  0x78   : > { %4146 = vmatmul.mubr.msk.f32.gmra.mxu1 %vm355_vm2, %v6501_v0  ;;  %4198 = vmatprep.mubr.msk.f32.mxu0 %vm355_vm2, %v5329_v13 }
  0x79   : > { %4148 = vmatprep.mubr.msk.f32.mxu1 %vm355_vm2, %v4987_v51 }
  0x7b   : > { %4199 = vmatmul.mubr.msk.f32.gmra.mxu0 %vm355_vm2, %v5338_v15 }
  0x7c   : > { %4149 = vmatmul.mubr.msk.f32.gmra.mxu1 %vm355_vm2, %v6502_v16  ;;  %4253 = vmatprep.mubr.msk.f32.mxu0 %vm355_vm2, %v6504_v52  ;;  %v6512_v52 = vld [vmem:[#allocation24_spill] sm:$0xff] }
  0x7d   : > { %4203 = vmatprep.mubr.msk.f32.mxu1 %vm355_vm2, %v4724_v14  ;;  %v6506_v14 = vld [vmem:[#allocation11_spill] sm:$0xff] }
  0x7f   : > { %4254 = vmatmul.mubr.msk.f32.vlgmr.msra.gmra.mxu0 %vm355_vm2, %v6505_v41  ;;  %v6513_v41 = vld [vmem:[#allocation27_spill] sm:$0xff] }
  0x80   : > { %4204 = vmatmul.mubr.msk.f32.vlgmr.msra.gmra.mxu1 %vm355_vm2, %v4729_v17  ;;  %4352 = vmatpush3.msk.msra.mxu0 %vm420_vm0, %v5095_v23  ;;  %v6507_v17 = vld [vmem:[#allocation13_spill] sm:$0xff]  ;;  %v6508_v23 = vld [vmem:[#allocation15_spill] sm:$0xff] }
  0x81   : > { %4302 = vmatpush3.msk.msra.mxu1 %vm420_vm0, %v5082_v9  ;;  %4206 = vmatprep.mubr.msk.f32.mxu1 %vm355_vm2, %v4771_v33  ;;  %v6509_v9 = vld [vmem:[#allocation17_spill] sm:$0xff] }
  0x82   : > { %4256 = vmatprep.mubr.msk.f32.mxu0 %vm355_vm2, %v6506_v14  ;;  %4401 = vmatprep.subr.msk.mxu1 %vm420_vm0, %v5355_v57 }
  0x83   : > { %4257 = vmatmul.mubr.msk.f32.gmra.mxu0 %vm355_vm2, %v6507_v17  ;;  %4451 = vmatprep.subr.msk.mxu0 %vm420_vm0, %v5364_v27 }
  0x84   : > { %4207 = vmatmul.mubr.msk.f32.gmra.mxu1 %vm355_vm2, %v4774_v34  ;;  %4259 = vmatprep.mubr.msk.f32.mxu0 %vm355_vm2, %v6508_v23 }
  0x85   : > { %4209 = vmatprep.mubr.msk.f32.mxu1 %vm355_vm2, %v4811_v47 }
  0x87   : > { %4260 = vmatmul.mubr.msk.f32.gmra.mxu0 %vm355_vm2, %v6509_v9 }
  0x88   : > { %4210 = vmatmul.mubr.msk.f32.gmra.mxu1 %vm355_vm2, %v4814_v48  ;;  %4262 = vmatprep.mubr.msk.f32.mxu0 %vm355_vm2, %v6510_v50  ;;  %v6514_v50 = vld [vmem:[#allocation29_spill] sm:$0xff] }
  0x89   : > { %4212 = vmatprep.mubr.msk.f32.mxu1 %vm355_vm2, %v4831_v55 }
  0x8b   : > { %4263 = vmatmul.mubr.msk.f32.gmra.mxu0 %vm355_vm2, %v6511_v46 }
  0x8c   : > { %4213 = vmatmul.mubr.msk.f32.gmra.mxu1 %vm355_vm2, %v4847_v61  ;;  %4265 = vmatprep.mubr.msk.f32.mxu0 %vm355_vm2, %v6512_v52  ;;  %v5481_v52 = vld [vmem:[%s4698_s7 + $0x190] sm:$0x3] }
  0x8d   : > { %4215 = vmatprep.mubr.msk.f32.mxu1 %vm355_vm2, %v4891_v25 }
  0x8f   : > { %4266 = vmatmul.mubr.msk.f32.gmra.mxu0 %vm355_vm2, %v6513_v41  ;;  %v5468_v41 = vld [vmem:[%s4698_s7 + $0x188] sm:$0xff] }
  0x90   : > { %4216 = vmatmul.mubr.msk.f32.gmra.mxu1 %vm355_vm2, %v4894_v30  ;;  %4268 = vmatprep.mubr.msk.f32.mxu0 %vm355_vm2, %v6514_v50  ;;  %v6515_v50 = vld [vmem:[#allocation5_spill] sm:$0xff] }
  0x91   : > { %4218 = vmatprep.mubr.msk.f32.mxu1 %vm355_vm2, %v4935_v59 }
  0x93   : > { %4269 = vmatmul.mubr.msk.f32.gmra.mxu0 %vm355_vm2, %v5029_v22  ;;  %v6516_v22 = vld [vmem:[#allocation6_spill] sm:$0xff] }
  0x94   : > { %4219 = vmatmul.mubr.msk.f32.gmra.mxu1 %vm355_vm2, %v4938_v1  ;;  %4271 = vmatprep.mubr.msk.f32.mxu0 %vm355_vm2, %v5039_v7  ;;  %v6517_v7 = vld [vmem:[#allocation8_spill] sm:$0xff] }
  0x95   : > { %4221 = vmatprep.mubr.msk.f32.mxu1 %vm355_vm2, %v4979_v24 }
  0x97   : > { %4272 = vmatmul.mubr.msk.f32.gmra.mxu0 %vm355_vm2, %v5054_v29  ;;  %v6518_v29 = vld [vmem:[#allocation10_spill] sm:$0xff] }
  0x98   : > { %4222 = vmatmul.mubr.msk.f32.gmra.mxu1 %vm355_vm2, %v4982_v40  ;;  %4274 = vmatprep.mubr.msk.f32.mxu0 %vm355_vm2, %v6515_v50  ;;  %v6519_v50 = vld [vmem:[#allocation12_spill] sm:$0xff] }
  0x99   : > { %4224 = vmatprep.mubr.msk.f32.mxu1 %vm355_vm2, %v4707_v5 }
  0x9b   : > { %4275 = vmatmul.mubr.msk.f32.gmra.mxu0 %vm355_vm2, %v6516_v22  ;;  %v6520_v22 = vld [vmem:[#allocation14_spill] sm:$0xff] }
  0x9c   : > { %4225 = vmatmul.mubr.msk.f32.gmra.mxu1 %vm355_vm2, %v4712_v8  ;;  %4277 = vmatprep.mubr.msk.f32.mxu0 %vm355_vm2, %v6517_v7  ;;  %v6521_v7 = vld [vmem:[#allocation16_spill] sm:$0xff] }
  0x9d   : > { %4227 = vmatprep.mubr.msk.f32.mxu1 %vm355_vm2, %v4733_v19 }
  0x9f   : > { %4278 = vmatmul.mubr.msk.f32.gmra.mxu0 %vm355_vm2, %v6518_v29  ;;  %v6522_v29 = vld [vmem:[#allocation18_spill] sm:$0xff] }
  0xa0   : > { %4228 = vmatmul.mubr.msk.f32.gmra.mxu1 %vm355_vm2, %v4736_v20  ;;  %4280 = vmatprep.mubr.msk.f32.mxu0 %vm355_vm2, %v6519_v50  ;;  %v6523_v50 = vld [vmem:[#allocation20_spill] sm:$0xff] }
  0xa1   : > { %4230 = vmatprep.mubr.msk.f32.mxu1 %vm355_vm2, %v4777_v35 }
  0xa3   : > { %4281 = vmatmul.mubr.msk.f32.gmra.mxu0 %vm355_vm2, %v6520_v22  ;;  %v6524_v22 = vld [vmem:[#allocation23_spill] sm:$0xff] }
  0xa4   : > { %4231 = vmatmul.mubr.msk.f32.gmra.mxu1 %vm355_vm2, %v4788_v39  ;;  %4283 = vmatprep.mubr.msk.f32.mxu0 %vm355_vm2, %v6521_v7  ;;  %v6525_v7 = vld [vmem:[#allocation25_spill] sm:$0xff] }
  0xa5   : > { %4233 = vmatprep.mubr.msk.f32.mxu1 %vm355_vm2, %v4825_v53 }
  0xa7   : > { %4284 = vmatmul.mubr.msk.f32.gmra.mxu0 %vm355_vm2, %v6522_v29  ;;  %v5465_v29 = vld [vmem:[%s4698_s7 + $0x180] sm:$0xff] }
  0xa8   : > { %4234 = vmatmul.mubr.msk.f32.gmra.mxu1 %vm355_vm2, %v4828_v54  ;;  %4286 = vmatprep.mubr.msk.f32.mxu0 %vm355_vm2, %v6523_v50  ;;  %v6526_v50 = vld [vmem:[#allocation28_spill] sm:$0xff] }
  0xa9   : > { %4236 = vmatprep.mubr.msk.f32.mxu1 %vm355_vm2, %v4864_v2 }
  0xab   : > { %4287 = vmatmul.mubr.msk.f32.gmra.mxu0 %vm355_vm2, %v6524_v22  ;;  %v1618_v22 = vrot.slane %v5468_v41, 1 }
  0xac   : > { %4237 = vmatmul.mubr.msk.f32.gmra.mxu1 %vm355_vm2, %v4867_v6  ;;  %4289 = vmatprep.mubr.msk.f32.mxu0 %vm355_vm2, %v6525_v7  ;;  %v1617_v7 = vrot.slane %v5465_v29, 1 }
  0xad   : > { %4239 = vmatprep.mubr.msk.f32.mxu1 %vm355_vm2, %v4899_v31 }
  0xaf   : > { %4290 = vmatmul.mubr.msk.f32.gmra.mxu0 %vm355_vm2, %v6526_v50  ;;  %v5493_v50 = vsel %vm272_vm1, %v1617_v7, %v1618_v22 }
  0xb0   : > { %4240 = vmatmul.mubr.msk.f32.gmra.mxu1 %vm355_vm2, %v4902_v32  ;;  %4292 = vmatprep.mubr.msk.f32.mxu0 %vm355_vm2, %v5015_v44  ;;  %v1620_v44 = vrot.slane %v5481_v52, 1  ;;  %6527 = vst [vmem:[#allocation26_spill] sm:$0xff] %v5493_v50 }
  0xb1   : > { %4242 = vmatprep.mubr.msk.f32.mxu1 %vm355_vm2, %v4943_v11 }
  0xb3   : > { %4293 = vmatmul.mubr.msk.f32.gmra.mxu0 %vm355_vm2, %v5036_v62  ;;  %v5502_v62 = vsel %vm272_vm1, %v1618_v22, %v1620_v44  ;;  %v6539_v22 = vld [vmem:[#allocation47_spill] sm:$0xff] }
  0xb4   : > { %4243 = vmatmul.mubr.msk.f32.gmra.mxu1 %vm355_vm2, %v6501_v0  ;;  %4295 = vmatprep.mubr.msk.f32.mxu0 %vm355_vm2, %v5044_v43  ;;  %6528 = vst [vmem:[#allocation7_spill] sm:$0xff] %v5502_v62 }
  0xb5   : > { %4245 = vmatprep.mubr.msk.f32.mxu1 %vm355_vm2, %v4987_v51 }
  0xb7   : > { %4296 = vmatmul.mubr.msk.f32.gmra.mxu0 %vm355_vm2, %v5059_v36  ;;  %v5679_v36 = vld [vmem:[%s4698_s7 + $0x198] sm:$0xff] }
  0xb8   : > { %4246 = vmatmul.mubr.msk.f32.gmra.mxu1 %vm355_vm2, %v6502_v16  ;;  %4298 = vmatprep.mubr.msk.f32.mxu0 %vm355_vm2, %v5493_v50 }
  0xb9   : > { %4248 = vmatprep.mubr.msk.f32.mxu1 %vm355_vm2, %v5465_v29 }
  0xbb   : > { %4299 = vmatmul.mubr.msk.f32.gmra.mxu0 %vm355_vm2, %v5502_v62 }
  0xbc   : > { %4249 = vmatmul.mubr.msk.f32.gmra.mxu1 %vm355_vm2, %v5468_v41  ;;  %4353 = vmatprep.mubr.msk.f32.mxu0 %vm355_vm2, %v4771_v33  ;;  %v6529_v33 = vld [vmem:[#allocation37_spill] sm:$0xff] }
  0xbd   : > { %4303 = vmatprep.mubr.msk.f32.mxu1 %vm355_vm2, %v5077_v18 }
  0xbf   : > { %4354 = vmatmul.mubr.msk.f32.vlgmr.msra.gmra.mxu0 %vm355_vm2, %v4774_v34  ;;  %v6530_v34 = vld [vmem:[#allocation38_spill] sm:$0xff] }
  0xc0   : > { %4304 = vmatmul.mubr.msk.f32.vlgmr.msra.gmra.mxu1 %vm355_vm2, %v5089_v3  ;;  %4452 = vmatpush3.msk.msra.mxu0 %vm420_vm0, %v5364_v27 }
  0xc1   : > { %4402 = vmatpush3.msk.msra.mxu1 %vm420_vm0, %v5355_v57  ;;  %4306 = vmatprep.mubr.msk.f32.mxu1 %vm355_vm2, %v5102_v4  ;;  %v1888_v57 = vrot.slane %v5465_v29, 2 }
  0xc2   : > { %4356 = vmatprep.mubr.msk.f32.mxu0 %vm355_vm2, %v4811_v47  ;;  %v6531_v47 = vld [vmem:[#allocation39_spill] sm:$0xff] }
  0xc3   : > { %4357 = vmatmul.mubr.msk.f32.gmra.mxu0 %vm355_vm2, %v4814_v48  ;;  %v6532_v48 = vld [vmem:[#allocation40_spill] sm:$0xff] }
  0xc4   : > { %4307 = vmatmul.mubr.msk.f32.gmra.mxu1 %vm355_vm2, %v5119_v21  ;;  %4359 = vmatprep.mubr.msk.f32.mxu0 %vm355_vm2, %v4831_v55  ;;  %v6533_v55 = vld [vmem:[#allocation41_spill] sm:$0xff] }
  0xc5   : > { %4309 = vmatprep.mubr.msk.f32.mxu1 %vm355_vm2, %v5125_v10 }
  0xc7   : > { %4360 = vmatmul.mubr.msk.f32.gmra.mxu0 %vm355_vm2, %v4847_v61 }
  0xc8   : > { %4310 = vmatmul.mubr.msk.f32.gmra.mxu1 %vm355_vm2, %v5136_v60  ;;  %4362 = vmatprep.mubr.msk.f32.mxu0 %vm355_vm2, %v4891_v25  ;;  %v6535_v25 = vld [vmem:[#allocation43_spill] sm:$0xff] }
  0xc9   : > { %4312 = vmatprep.mubr.msk.f32.mxu1 %vm355_vm2, %v5142_v49 }
  0xcb   : > { %4363 = vmatmul.mubr.msk.f32.gmra.mxu0 %vm355_vm2, %v4894_v30  ;;  %v6536_v30 = vld [vmem:[#allocation44_spill] sm:$0xff] }
  0xcc   : > { %4313 = vmatmul.mubr.msk.f32.gmra.mxu1 %vm355_vm2, %v6529_v33  ;;  %4365 = vmatprep.mubr.msk.f32.mxu0 %vm355_vm2, %v4935_v59 }
  0xcd   : > { %4315 = vmatprep.mubr.msk.f32.mxu1 %vm355_vm2, %v5159_v12 }
  0xcf   : > { %4366 = vmatmul.mubr.msk.f32.gmra.mxu0 %vm355_vm2, %v4938_v1 }
  0xd0   : > { %4316 = vmatmul.mubr.msk.f32.gmra.mxu1 %vm355_vm2, %v6530_v34  ;;  %4368 = vmatprep.mubr.msk.f32.mxu0 %vm355_vm2, %v4979_v24  ;;  %v6537_v24 = vld [vmem:[#allocation45_spill] sm:$0xff] }
  0xd1   : > { %4318 = vmatprep.mubr.msk.f32.mxu1 %vm355_vm2, %v5176_v37 }
  0xd3   : > { %4369 = vmatmul.mubr.msk.f32.gmra.mxu0 %vm355_vm2, %v4982_v40  ;;  %v6538_v40 = vld [vmem:[#allocation46_spill] sm:$0xff] }
  0xd4   : > { %4319 = vmatmul.mubr.msk.f32.gmra.mxu1 %vm355_vm2, %v6531_v47  ;;  %4371 = vmatprep.mubr.msk.f32.mxu0 %vm355_vm2, %v4707_v5 }
  0xd5   : > { %4321 = vmatprep.mubr.msk.f32.mxu1 %vm355_vm2, %v5193_v28 }
  0xd7   : > { %4372 = vmatmul.mubr.msk.f32.gmra.mxu0 %vm355_vm2, %v4712_v8 }
  0xd8   : > { %4322 = vmatmul.mubr.msk.f32.gmra.mxu1 %vm355_vm2, %v6532_v48  ;;  %4374 = vmatprep.mubr.msk.f32.mxu0 %vm355_vm2, %v4733_v19  ;;  %v6534_v19 = vld [vmem:[#allocation42_spill] sm:$0xff] }
  0xd9   : > { %4324 = vmatprep.mubr.msk.f32.mxu1 %vm355_vm2, %v5210_v45 }
  0xdb   : > { %4375 = vmatmul.mubr.msk.f32.gmra.mxu0 %vm355_vm2, %v4736_v20 }
  0xdc   : > { %4325 = vmatmul.mubr.msk.f32.gmra.mxu1 %vm355_vm2, %v6533_v55  ;;  %4377 = vmatprep.mubr.msk.f32.mxu0 %vm355_vm2, %v4777_v35 }
  0xdd   : > { %4327 = vmatprep.mubr.msk.f32.mxu1 %vm355_vm2, %v5227_v26 }
  0xdf   : > { %v5582_v5 = vpop.f32.mrf.mxu0  ;;  %4378 = vmatmul.mubr.msk.f32.gmra.mxu0 %vm355_vm2, %v4788_v39 }
  0xe0   : > { %v5586_v8 = vpop.f32.mrf.mxu1  ;;  %4328 = vmatmul.mubr.msk.f32.gmra.mxu1 %vm355_vm2, %v6534_v19  ;;  %4380 = vmatprep.mubr.msk.f32.mxu0 %vm355_vm2, %v4825_v53 }
  0xe1   : > { %v5592_v20 = vpop.f32.mrf.mxu0  ;;  %4330 = vmatprep.mubr.msk.f32.mxu1 %vm355_vm2, %v5244_v42 }
  0xe2   : > { %v5596_v35 = vpop.f32.mrf.mxu1 }
  0xe3   : > { %v5598_v61 = vpop.f32.mrf.mxu0  ;;  %4381 = vmatmul.mubr.msk.f32.gmra.mxu0 %vm355_vm2, %v4828_v54 }
  0xe4   : > { %v5602_v39 = vpop.f32.mrf.mxu1  ;;  %4331 = vmatmul.mubr.msk.f32.gmra.mxu1 %vm355_vm2, %v6535_v25  ;;  %4383 = vmatprep.mubr.msk.f32.mxu0 %vm355_vm2, %v4864_v2 }
  0xe5   : > { %v5608_v53 = vpop.f32.mrf.mxu0  ;;  %4333 = vmatprep.mubr.msk.f32.mxu1 %vm355_vm2, %v6536_v30 }
  0xe6   : > { %v5612_v59 = vpop.f32.mrf.mxu1 }
  0xe7   : > { %v5614_v1 = vpop.f32.mrf.mxu0  ;;  %4384 = vmatmul.mubr.msk.f32.gmra.mxu0 %vm355_vm2, %v4867_v6 }
  0xe8   : > { %v5618_v54 = vpop.f32.mrf.mxu1  ;;  %4334 = vmatmul.mubr.msk.f32.gmra.mxu1 %vm355_vm2, %v6537_v24  ;;  %4386 = vmatprep.mubr.msk.f32.mxu0 %vm355_vm2, %v4899_v31 }
  0xe9   : > { %v5624_v2 = vpop.f32.mrf.mxu0  ;;  %4336 = vmatprep.mubr.msk.f32.mxu1 %vm355_vm2, %v6538_v40 }
  0xea   : > { %v5628_v7 = vpop.f32.mrf.mxu1 }
  0xeb   : > { %v5630_v44 = vpop.f32.mrf.mxu0  ;;  %4387 = vmatmul.mubr.msk.f32.gmra.mxu0 %vm355_vm2, %v4902_v32 }
  0xec   : > { %v5634_v6 = vpop.f32.mrf.mxu1  ;;  %4337 = vmatmul.mubr.msk.f32.gmra.mxu1 %vm355_vm2, %v6539_v22  ;;  %4389 = vmatprep.mubr.msk.f32.mxu0 %vm355_vm2, %v4943_v11 }
  0xed   : > { %v5640_v31 = vpop.f32.mrf.mxu0  ;;  %4339 = vmatprep.mubr.msk.f32.mxu1 %vm355_vm2, %v5295_v38 }
  0xee   : > { %v5644_v18 = vpop.f32.mrf.mxu1 }
  0xef   : > { %v5646_v3 = vpop.f32.mrf.mxu0  ;;  %4390 = vmatmul.mubr.msk.f32.gmra.mxu0 %vm355_vm2, %v6501_v0  ;;  %v1889_v0 = vrot.slane %v5468_v41, 2 }
  0xf0   : > { %v5650_v32 = vpop.f32.mrf.mxu1  ;;  %4340 = vmatmul.mubr.msk.f32.gmra.mxu1 %vm355_vm2, %v5306_v58  ;;  %4392 = vmatprep.mubr.msk.f32.mxu0 %vm355_vm2, %v4987_v51 }
  0xf1   : > { %6540 = vst [vmem:[#allocation9_spill] sm:$0xff] %v5650_v32  ;;  %v5656_v11 = vpop.f32.mrf.mxu0  ;;  %4342 = vmatprep.mubr.msk.f32.mxu1 %vm355_vm2, %v5312_v56  ;;  %v5698_v32 = vld [vmem:[%s4698_s7 + $0x1a0] sm:$0xff] }
  0xf2   : > { %v5661_v27 = vpop.f32.mrf.mxu1 }
  0xf3   : > { %6541 = vst [vmem:[#allocation11_spill] sm:$0xff] %v5661_v27  ;;  %v5664_v62 = vpop.f32.mrf.mxu0  ;;  %4393 = vmatmul.mubr.msk.f32.gmra.mxu0 %vm355_vm2, %v6502_v16  ;;  %v1891_v27 = vrot.slane %v5481_v52, 2  ;;  %v5685_v16 = vsel %vm941_vm3, %v1888_v57, %v1889_v0 }
  0xf4   : > { %v5668_v50 = vpop.f32.mrf.mxu1  ;;  %4343 = vmatmul.mubr.msk.f32.gmra.mxu1 %vm355_vm2, %v5323_v63  ;;  %4395 = vmatprep.mubr.msk.f32.mxu0 %vm355_vm2, %v5465_v29  ;;  %6544 = vst [vmem:[#allocation17_spill] sm:$0xff] %v5685_v16 }
  0xf5   : > { %6542 = vst [vmem:[#allocation13_spill] sm:$0xff] %v5668_v50  ;;  %v5674_v51 = vpop.f32.mrf.mxu0  ;;  %4345 = vmatprep.mubr.msk.f32.mxu1 %vm355_vm2, %v5329_v13  ;;  %v5705_v57 = vsel %vm941_vm3, %v1889_v0, %v1891_v27 }
  0xf6   : > { %v5682_v43 = vpop.f32.mrf.mxu1  ;;  %6546 = vst [vmem:[#allocation37_spill] sm:$0xff] %v5705_v57 }
  0xf7   : > { %6543 = vst [vmem:[#allocation15_spill] sm:$0xff] %v5682_v43  ;;  %v5687_v50 = vpop.f32.mrf.mxu0  ;;  %4396 = vmatmul.mubr.msk.f32.gmra.mxu0 %vm355_vm2, %v5468_v41 }
  0xf8   : > { %v5691_v29 = vpop.f32.mrf.mxu1  ;;  %4346 = vmatmul.mubr.msk.f32.gmra.mxu1 %vm355_vm2, %v5338_v15  ;;  %4398 = vmatprep.mubr.msk.f32.mxu0 %vm355_vm2, %v5679_v36 }
  0xf9   : > { %6545 = vst [vmem:[#allocation22_spill] sm:$0xff] %v5691_v29  ;;  %v5700_v52 = vpop.f32.mrf.mxu0  ;;  %4348 = vmatprep.mubr.msk.f32.mxu1 %vm355_vm2, %v5685_v16 }
  0xfa   : > { %v5707_v43 = vpop.f32.mrf.mxu1 }
  0xfb   : > { %6547 = vst [vmem:[#allocation38_spill] sm:$0xff] %v5707_v43  ;;  %v5709_v41 = vpop.f32.mrf.mxu0  ;;  %4399 = vmatmul.mubr.msk.f32.gmra.mxu0 %vm355_vm2, %v5698_v32 }
  0xfc   : > { %v5713_v29 = vpop.f32.mrf.mxu1  ;;  %4349 = vmatmul.mubr.msk.f32.gmra.mxu1 %vm355_vm2, %v5705_v57  ;;  %4453 = vmatprep.mubr.msk.f32.mxu0 %vm355_vm2, %v5102_v4 }
  0xfd   : > { %6548 = vst [vmem:[#allocation39_spill] sm:$0xff] %v5713_v29  ;;  %v5719_v15 = vpop.f32.mrf.mxu0  ;;  %4403 = vmatprep.mubr.msk.f32.mxu1 %vm355_vm2, %v6506_v14 }
  0xfe   : > { %v5723_v27 = vpop.f32.mrf.mxu1 }
  0xff   : > { %6549 = vst [vmem:[#allocation40_spill] sm:$0xff] %v5723_v27  ;;  %v4155_v0 = vpop.f32.mrf.mxu0  ;;  %4454 = vmatmul.mubr.msk.f32.vlgmr.msra.gmra.mxu0 %vm355_vm2, %v5119_v21 }
 0x100   : > { %v4105_v43 = vpop.f32.mrf.mxu1  ;;  %4404 = vmatmul.mubr.msk.f32.vlgmr.msra.gmra.mxu1 %vm355_vm2, %v6507_v17  ;;  %4456 = vmatprep.mubr.msk.f32.mxu0 %vm355_vm2, %v5125_v10 }
 0x101   : > { %v788_v4 = vadd.f32 %v4105_v43, %v5582_v5  ;;  %v1157_v29 = vpop.f32.mrf.mxu0  ;;  %4406 = vmatprep.mubr.msk.f32.mxu1 %vm355_vm2, %v6508_v23  ;;  %v6550_v23 = vld [vmem:[#allocation19_spill] sm:$0xff] }
 0x102   : > { %v782_v14 = vpop.f32.mrf.mxu1 }
 0x103   : > { %v5734_v57 = vadd.f32 %v4155_v0, %v788_v4  ;;  %v783_v27 = vadd.f32 %v782_v14, %v5592_v20  ;;  %v4158_v16 = vpop.f32.mrf.mxu0  ;;  %4457 = vmatmul.mubr.msk.f32.gmra.mxu0 %vm355_vm2, %v5136_v60  ;;  %v6552_v14 = vld [vmem:[#allocation27_spill] sm:$0xff] }
 0x104   : > { %v4108_v21 = vpop.f32.mrf.mxu1  ;;  %4407 = vmatmul.mubr.msk.f32.gmra.mxu1 %vm355_vm2, %v6509_v9  ;;  %4459 = vmatprep.mubr.msk.f32.mxu0 %vm355_vm2, %v5142_v49 }
 0x105   : > { %v5743_v43 = vadd.f32 %v1157_v29, %v783_v27  ;;  %v798_v10 = vadd.f32 %v4108_v21, %v5598_v61  ;;  %v1167_v17 = vpop.f32.mrf.mxu0  ;;  %4409 = vmatprep.mubr.msk.f32.mxu1 %vm355_vm2, %v6550_v23 }
 0x106   : > { %v792_v5 = vpop.f32.mrf.mxu1 }
 0x107   : > { %v5748_v20 = vadd.f32 %v4158_v16, %v798_v10  ;;  %v793_v60 = vadd.f32 %v792_v5, %v5608_v53  ;;  %v4161_v0 = vpop.f32.mrf.mxu0  ;;  %4460 = vmatmul.mubr.msk.f32.gmra.mxu0 %vm355_vm2, %v6529_v33  ;;  %v6551_v16 = vld [vmem:[#allocation24_spill] sm:$0xff]  ;;  %v6553_v10 = vld [vmem:[#allocation29_spill] sm:$0xff] }
 0x108   : > { %v4111_v9 = vpop.f32.mrf.mxu1  ;;  %4410 = vmatmul.mubr.msk.f32.gmra.mxu1 %vm355_vm2, %v6511_v46  ;;  %4462 = vmatprep.mubr.msk.f32.mxu0 %vm355_vm2, %v5159_v12 }
 0x109   : > { %v5757_v49 = vadd.f32 %v1167_v17, %v793_v60  ;;  %v808_v61 = vadd.f32 %v4111_v9, %v5614_v1  ;;  %v1177_v29 = vpop.f32.mrf.mxu0  ;;  %4412 = vmatprep.mubr.msk.f32.mxu1 %vm355_vm2, %v6551_v16  ;;  %v6554_v60 = vld [vmem:[#allocation31_spill] sm:$0xff]  ;;  %v6555_v9 = vld [vmem:[#allocation33_spill] sm:$0xff] }
 0x10a   : > { %v802_v53 = vpop.f32.mrf.mxu1 }
 0x10b   : > { %v5762_v27 = vadd.f32 %v4161_v0, %v808_v61  ;;  %v803_v33 = vadd.f32 %v802_v53, %v5624_v2  ;;  %v4164_v4 = vpop.f32.mrf.mxu0  ;;  %4463 = vmatmul.mubr.msk.f32.gmra.mxu0 %vm355_vm2, %v6530_v34  ;;  %v6556_v53 = vld [vmem:[#allocation35_spill] sm:$0xff] }
 0x10c   : > { %v4114_v46 = vpop.f32.mrf.mxu1  ;;  %4413 = vmatmul.mubr.msk.f32.gmra.mxu1 %vm355_vm2, %v6552_v14  ;;  %4465 = vmatprep.mubr.msk.f32.mxu0 %vm355_vm2, %v5176_v37 }
 0x10d   : > { %v5771_v12 = vadd.f32 %v1177_v29, %v803_v33  ;;  %v818_v1 = vadd.f32 %v4114_v46, %v5630_v44  ;;  %v1187_v21 = vpop.f32.mrf.mxu0  ;;  %4415 = vmatprep.mubr.msk.f32.mxu1 %vm355_vm2, %v6553_v10 }
 0x10e   : > { %v812_v2 = vpop.f32.mrf.mxu1 }
 0x10f   : > { %v5776_v17 = vadd.f32 %v4164_v4, %v818_v1  ;;  %v813_v34 = vadd.f32 %v812_v2, %v5640_v31  ;;  %v4167_v23 = vpop.f32.mrf.mxu0  ;;  %4466 = vmatmul.mubr.msk.f32.gmra.mxu0 %vm355_vm2, %v6531_v47  ;;  %v6557_v4 = vld [vmem:[#allocation5_spill] sm:$0xff]  ;;  %v6559_v2 = vld [vmem:[#allocation8_spill] sm:$0xff] }
 0x110   : > { %v4117_v5 = vpop.f32.mrf.mxu1  ;;  %4416 = vmatmul.mubr.msk.f32.gmra.mxu1 %vm355_vm2, %v6554_v60  ;;  %4468 = vmatprep.mubr.msk.f32.mxu0 %vm355_vm2, %v5193_v28  ;;  %v6560_v60 = vld [vmem:[#allocation10_spill] sm:$0xff] }
 0x111   : > { %v5785_v37 = vadd.f32 %v1187_v21, %v813_v34  ;;  %v828_v44 = vadd.f32 %v4117_v5, %v5646_v3  ;;  %v1197_v0 = vpop.f32.mrf.mxu0  ;;  %4418 = vmatprep.mubr.msk.f32.mxu1 %vm355_vm2, %v6555_v9  ;;  %v6558_v21 = vld [vmem:[#allocation6_spill] sm:$0xff] }
 0x112   : > { %v822_v31 = vpop.f32.mrf.mxu1 }
 0x113   : > { %v5790_v61 = vadd.f32 %v4167_v23, %v828_v44  ;;  %v823_v47 = vadd.f32 %v822_v31, %v5656_v11  ;;  %v4170_v29 = vpop.f32.mrf.mxu0  ;;  %4469 = vmatmul.mubr.msk.f32.gmra.mxu0 %vm355_vm2, %v6532_v48 }
 0x114   : > { %v4120_v16 = vpop.f32.mrf.mxu1  ;;  %4419 = vmatmul.mubr.msk.f32.gmra.mxu1 %vm355_vm2, %v6556_v53  ;;  %4471 = vmatprep.mubr.msk.f32.mxu0 %vm355_vm2, %v5210_v45  ;;  %v6563_v53 = vld [vmem:[#allocation16_spill] sm:$0xff] }
 0x115   : > { %v5799_v28 = vadd.f32 %v1197_v0, %v823_v47  ;;  %v838_v3 = vadd.f32 %v4120_v16, %v5664_v62  ;;  %v1207_v33 = vpop.f32.mrf.mxu0  ;;  %4421 = vmatprep.mubr.msk.f32.mxu1 %vm355_vm2, %v6557_v4  ;;  %v6561_v0 = vld [vmem:[#allocation12_spill] sm:$0xff] }
 0x116   : > { %v832_v11 = vpop.f32.mrf.mxu1 }
 0x117   : > { %v5804_v46 = vadd.f32 %v4170_v29, %v838_v3  ;;  %v833_v48 = vadd.f32 %v832_v11, %v5674_v51  ;;  %v4173_v14 = vpop.f32.mrf.mxu0  ;;  %4472 = vmatmul.mubr.msk.f32.gmra.mxu0 %vm355_vm2, %v6533_v55  ;;  %v6562_v29 = vld [vmem:[#allocation14_spill] sm:$0xff] }
 0x118   : > { %v4123_v1 = vpop.f32.mrf.mxu1  ;;  %4422 = vmatmul.mubr.msk.f32.gmra.mxu1 %vm355_vm2, %v6558_v21  ;;  %4474 = vmatprep.mubr.msk.f32.mxu0 %vm355_vm2, %v5227_v26  ;;  %v6564_v11 = vld [vmem:[#allocation18_spill] sm:$0xff] }
 0x119   : > { %v5813_v62 = vadd.f32 %v1207_v33, %v833_v48  ;;  %v848_v45 = vadd.f32 %v4123_v1, %v5687_v50  ;;  %v1217_v10 = vpop.f32.mrf.mxu0  ;;  %4424 = vmatprep.mubr.msk.f32.mxu1 %vm355_vm2, %v6559_v2 }
 0x11a   : > { %v842_v51 = vpop.f32.mrf.mxu1 }
 0x11b   : > { %v5818_v34 = vadd.f32 %v4173_v14, %v848_v45  ;;  %v843_v55 = vadd.f32 %v842_v51, %v5700_v52  ;;  %v4176_v23 = vpop.f32.mrf.mxu0  ;;  %4475 = vmatmul.mubr.msk.f32.gmra.mxu0 %vm355_vm2, %v6534_v19  ;;  %v6565_v14 = vld [vmem:[#allocation20_spill] sm:$0xff]  ;;  %v6567_v51 = vld [vmem:[#allocation25_spill] sm:$0xff] }
 0x11c   : > { %v4126_v5 = vpop.f32.mrf.mxu1  ;;  %4425 = vmatmul.mubr.msk.f32.gmra.mxu1 %vm355_vm2, %v6560_v60  ;;  %4477 = vmatprep.mubr.msk.f32.mxu0 %vm355_vm2, %v5244_v42  ;;  %v6568_v60 = vld [vmem:[#allocation28_spill] sm:$0xff] }
 0x11d   : > { %v5827_v26 = vadd.f32 %v1217_v10, %v843_v55  ;;  %v858_v50 = vadd.f32 %v4126_v5, %v5709_v41  ;;  %v1227_v44 = vpop.f32.mrf.mxu0  ;;  %4427 = vmatprep.mubr.msk.f32.mxu1 %vm355_vm2, %v6561_v0  ;;  %v6566_v10 = vld [vmem:[#allocation23_spill] sm:$0xff] }
 0x11e   : > { %v852_v52 = vpop.f32.mrf.mxu1 }
 0x11f   : > { %v5832_v9 = vadd.f32 %v4176_v23, %v858_v50  ;;  %v853_v19 = vadd.f32 %v852_v52, %v5719_v15  ;;  %v4179_v31 = vpop.f32.mrf.mxu0  ;;  %4478 = vmatmul.mubr.msk.f32.gmra.mxu0 %vm355_vm2, %v6535_v25 }
 0x120   : > { %v4129_v47 = vpop.f32.mrf.mxu1  ;;  %4428 = vmatmul.mubr.msk.f32.gmra.mxu1 %vm355_vm2, %v6562_v29  ;;  %4480 = vmatprep.mubr.msk.f32.mxu0 %vm355_vm2, %v6536_v30  ;;  %v6571_v29 = vld [vmem:[#allocation9_spill] sm:$0xff] }
 0x121   : > { %v5841_v42 = vadd.f32 %v1227_v44, %v853_v19  ;;  %v868_v41 = vadd.f32 %v4129_v47, %v5586_v8  ;;  %v1237_v16 = vpop.f32.mrf.mxu0  ;;  %4430 = vmatprep.mubr.msk.f32.mxu1 %vm355_vm2, %v6563_v53  ;;  %v6569_v44 = vld [vmem:[#allocation30_spill] sm:$0xff]  ;;  %v2428_v53 = vrot.slane %v5679_v36, 1 }
 0x122   : > { %v862_v15 = vpop.f32.mrf.mxu1 }
 0x123   : > { %v5846_v3 = vadd.f32 %v4179_v31, %v868_v41  ;;  %v863_v25 = vadd.f32 %v862_v15, %v5596_v35  ;;  %v4182_v33 = vpop.f32.mrf.mxu0  ;;  %4481 = vmatmul.mubr.msk.f32.gmra.mxu0 %vm355_vm2, %v6537_v24  ;;  %v2700_v31 = vrot.slane %v5698_v32, 2  ;;  %v2429_v15 = vrot.slane %v5698_v32, 1  ;;  %v6577_v32 = vld [vmem:[#allocation13_spill] sm:$0xff] }
 0x124   : > { %v4132_v4 = vpop.f32.mrf.mxu1  ;;  %4431 = vmatmul.mubr.msk.f32.gmra.mxu1 %vm355_vm2, %v6564_v11  ;;  %4483 = vmatprep.mubr.msk.f32.mxu0 %vm355_vm2, %v6538_v40 }
 0x125   : > { %v5855_v8 = vadd.f32 %v1237_v16, %v863_v25  ;;  %v878_v30 = vadd.f32 %v4132_v4, %v5602_v39  ;;  %v1247_v48 = vpop.f32.mrf.mxu0  ;;  %4433 = vmatprep.mubr.msk.f32.mxu1 %vm355_vm2, %v6565_v14  ;;  %v6572_v16 = vld [vmem:[#allocation34_spill] sm:$0xff]  ;;  %v6575_v14 = vld [vmem:[#allocation36_spill] sm:$0xff] }
 0x126   : > { %v872_v35 = vpop.f32.mrf.mxu1 }
 0x127   : > { %v5860_v1 = vadd.f32 %v4182_v33, %v878_v30  ;;  %v873_v24 = vadd.f32 %v872_v35, %v5612_v59  ;;  %v4185_v21 = vpop.f32.mrf.mxu0  ;;  %4484 = vmatmul.mubr.msk.f32.gmra.mxu0 %vm355_vm2, %v6539_v22  ;;  %v6574_v30 = vld [vmem:[#allocation21_spill] sm:$0xff] }
 0x128   : > { %v4135_v45 = vpop.f32.mrf.mxu1  ;;  %4434 = vmatmul.mubr.msk.f32.gmra.mxu1 %vm355_vm2, %v6566_v10  ;;  %4486 = vmatprep.mubr.msk.f32.mxu0 %vm355_vm2, %v5295_v38  ;;  %v6576_v35 = vld [vmem:[#allocation17_spill] sm:$0xff]  ;;  %v6578_v10 = vld [vmem:[#allocation26_spill] sm:$0xff] }
 0x129   : > { %v5869_v39 = vadd.f32 %v1247_v48, %v873_v24  ;;  %v888_v40 = vadd.f32 %v4135_v45, %v5618_v54  ;;  %v1257_v2 = vpop.f32.mrf.mxu0  ;;  %4436 = vmatprep.mubr.msk.f32.mxu1 %vm355_vm2, %v6567_v51 }
 0x12a   : > { %v882_v59 = vpop.f32.mrf.mxu1 }
 0x12b   : > { %v5874_v55 = vadd.f32 %v4185_v21, %v888_v40  ;;  %v883_v22 = vadd.f32 %v882_v59, %v5628_v7  ;;  %v4188_v23 = vpop.f32.mrf.mxu0  ;;  %4487 = vmatmul.mubr.msk.f32.gmra.mxu0 %vm355_vm2, %v5306_v58  ;;  %v2430_v59 = vsel %vm272_vm1, %v2428_v53, %v2429_v15 }
 0x12c   : > { %v4138_v5 = vpop.f32.mrf.mxu1  ;;  %4437 = vmatmul.mubr.msk.f32.gmra.mxu1 %vm355_vm2, %v6568_v60  ;;  %4489 = vmatprep.mubr.msk.f32.mxu0 %vm355_vm2, %v5312_v56  ;;  %v6570_v56 = vld [vmem:[#allocation32_spill] sm:$0xff] }
 0x12d   : > { %v5883_v38 = vadd.f32 %v1257_v2, %v883_v22  ;;  %v898_v54 = vadd.f32 %v4138_v5, %v5634_v6  ;;  %v1267_v50 = vpop.f32.mrf.mxu0  ;;  %4439 = vmatprep.mubr.msk.f32.mxu1 %vm355_vm2, %v6569_v44  ;;  %v2699_v6 = vrot.slane %v5679_v36, 2  ;;  %v6581_v44 = vld [vmem:[#allocation7_spill] sm:$0xff] }
 0x12e   : > { %v892_v7 = vpop.f32.mrf.mxu1 }
 0x12f   : > { %v5888_v0 = vadd.f32 %v4188_v23, %v898_v54  ;;  %v893_v58 = vadd.f32 %v892_v7, %v5644_v18  ;;  %v4191_v52 = vpop.f32.mrf.mxu0  ;;  %4490 = vmatmul.mubr.msk.f32.gmra.mxu0 %vm355_vm2, %v5323_v63  ;;  %v222_v63 = vld [vmem:[%s4698_s7 + $0x1a8] sm:$0x3]  ;;  %v2701_v40 = vsel %vm941_vm3, %v2699_v6, %v2700_v31  ;;  %v6579_v23 = vld [vmem:[#allocation15_spill] sm:$0xff]  ;;  %v6580_v54 = vld [vmem:[#allocation37_spill] sm:$0xff]  ;;  %s3658_s7 = sshll.u32 %s4651_s16, 11  ;;  %s4545_s16 = scalar_lea.vmem %s6325_s8, 2048 }
 0x130   : > { %v4141_v19 = vpop.f32.mrf.mxu1  ;;  %4440 = vmatmul.mubr.msk.f32.gmra.mxu1 %vm355_vm2, %v6570_v56  ;;  %4492 = vmatprep.mubr.msk.f32.mxu0 %vm355_vm2, %v5329_v13  ;;  %v6573_v13 = vld [vmem:[#allocation11_spill] sm:$0xff]  ;;  %v2702_v24 = vrot.slane %v222_v63, 2  ;;  %v2431_v2 = vrot.slane %v222_v63, 1  ;;  %s6323_s11 = scalar_lea.hbm %s6373_s3, %s3658_s7  ;;  %p4546_p11 = scmp.ne.s32.totalorder %s6325_s8, %s4545_s16 }
 0x131   : > { %v5899_v47 = vadd.f32 %v1267_v50, %v893_v58  ;;  %v908_v41 = vadd.f32 %v4141_v19, %v6571_v29  ;;  %v1277_v18 = vpop.f32.mrf.mxu0  ;;  %4442 = vmatprep.mubr.msk.f32.mxu1 %vm355_vm2, %v6572_v16  ;;  %p4553_p1 = scmp.lt.s32.totalorder %s4551_s24, %s4545_s16 }
 0x132   : > { %v902_v25 = vpop.f32.mrf.mxu1  ;;  %v2703_v7 = vsel %vm941_vm3, %v2700_v31, %v2702_v24  ;;  %v2432_v6 = vsel %vm272_vm1, %v2429_v15, %v2431_v2  ;;  %v6585_v15 = vld [vmem:[#allocation40_spill] sm:$0xff]  ;;  %p4547_p12 = pnand %p4546_p11, %p4668_p5 }
 0x133   : > { %v5907_v33 = vadd.f32 %v4191_v52, %v908_v41  ;;  %v903_v4 = vadd.f32 %v902_v25, %v6573_v13  ;;  %v4194_v11 = vpop.f32.mrf.mxu0  ;;  %4493 = vmatmul.mubr.msk.f32.gmra.mxu0 %vm355_vm2, %v6574_v30  ;;  %v6582_v52 = vld [vmem:[#allocation22_spill] sm:$0xff]  ;;  %v6584_v25 = vld [vmem:[#allocation39_spill] sm:$0xff]  ;;  %p4554_p2 = por %p4553_p1, %p4552_p0 }
 0x134   : > { %v4144_v48 = vpop.f32.mrf.mxu1  ;;  %4443 = vmatmul.mubr.msk.f32.gmra.mxu1 %vm355_vm2, %v6575_v14  ;;  %4495 = vmatprep.mubr.msk.f32.mxu0 %vm355_vm2, %v6576_v35  ;;  %p4548_p13 = pneg %p4547_p12 }
 0x135   : > { %v5916_v36 = vadd.f32 %v1277_v18, %v903_v4  ;;  %v918_v21 = vadd.f32 %v4144_v48, %v6577_v32  ;;  %v1287_v45 = vpop.f32.mrf.mxu0  ;;  %4445 = vmatprep.mubr.msk.f32.mxu1 %vm355_vm2, %v6578_v10  ;;  %v6583_v18 = vld [vmem:[#allocation38_spill] sm:$0xff] }
 0x136   : > { %v912_v51 = vpop.f32.mrf.mxu1  ;;  %p4555_p3 = pnand %p4554_p2, %p4548_p13 }
 0x137   : > { %v5923_v22 = vadd.f32 %v4194_v11, %v918_v21  ;;  %v913_v5 = vadd.f32 %v912_v51, %v6579_v23  ;;  %v4197_v60 = vpop.f32.mrf.mxu0  ;;  %4496 = vmatmul.mubr.msk.f32.gmra.mxu0 %vm355_vm2, %v6580_v54 }
 0x138   : > { %v4147_v50 = vpop.f32.mrf.mxu1  ;;  %4446 = vmatmul.mubr.msk.f32.gmra.mxu1 %vm355_vm2, %v6581_v44  ;;  %4498 = vmatprep.mubr.msk.f32.mxu0 %vm355_vm2, %v2701_v40 }
 0x139   : > { %v5932_v58 = vadd.f32 %v1287_v45, %v913_v5  ;;  %v928_v19 = vadd.f32 %v4147_v50, %v6582_v52  ;;  %v1297_v56 = vpop.f32.mrf.mxu0  ;;  %4448 = vmatprep.mubr.msk.f32.mxu1 %vm355_vm2, %v2430_v59 }
 0x13a   : > { %v922_v29 = vpop.f32.mrf.mxu1 }
 0x13b   : > { %v5937_v41 = vadd.f32 %v4197_v60, %v928_v19  ;;  %v923_v16 = vadd.f32 %v922_v29, %v6583_v18  ;;  %v4200_v63 = vpop.f32.mrf.mxu0  ;;  %4499 = vmatmul.mubr.msk.f32.gmra.mxu0 %vm355_vm2, %v2703_v7 }
 0x13c   : > { %v4150_v53 = vpop.f32.mrf.mxu1  ;;  %4449 = vmatmul.mubr.msk.f32.gmra.mxu1 %vm355_vm2, %v2432_v6 }
 0x13d   : > { %v5942_v31 = vadd.f32 %v1297_v56, %v923_v16  ;;  %v938_v13 = vadd.f32 %v4150_v53, %v6584_v25  ;;  %v1307_v4 = vpop.f32.mrf.mxu0 }
 0x13e   : > { %v932_v11 = vpop.f32.mrf.mxu1 }
 0x13f   : > { %v5945_v30 = vadd.f32 %v4200_v63, %v938_v13  ;;  %v933_v48 = vadd.f32 %v932_v11, %v6585_v15  ;;  %v4255_v14 = vpop.f32.mrf.mxu0 }
 0x140   : > { %v4205_v35 = vpop.f32.mrf.mxu1 }
 0x141   : > { %v5948_v24 = vadd.f32 %v1307_v4, %v933_v48  ;;  %v1585_v32 = vadd.f32 %v4205_v35, %v5734_v57  ;;  %v1697_v21 = vpop.f32.mrf.mxu0 }
 0x142   : > { %v1425_v45 = vpop.f32.mrf.mxu1 }
 0x143   : > { %v5951_v10 = vadd.f32 %v4255_v14, %v1585_v32  ;;  %v1584_v40 = vadd.f32 %v1425_v45, %v5743_v43  ;;  %v4258_v2 = vpop.f32.mrf.mxu0 }
 0x144   : > { %v4208_v51 = vpop.f32.mrf.mxu1 }
 0x145   : > { %v5954_v59 = vadd.f32 %v1697_v21, %v1584_v40  ;;  %v1587_v23 = vadd.f32 %v4208_v51, %v5748_v20  ;;  %v1707_v5 = vpop.f32.mrf.mxu0 }
 0x146   : > { %v1435_v60 = vpop.f32.mrf.mxu1 }
 0x147   : > { %v5957_v54 = vadd.f32 %v4258_v2, %v1587_v23  ;;  %v1586_v50 = vadd.f32 %v1435_v60, %v5757_v49  ;;  %v4261_v44 = vpop.f32.mrf.mxu0 }
 0x148   : > { %v4211_v57 = vpop.f32.mrf.mxu1 }
 0x149   : > { %v5960_v7 = vadd.f32 %v1707_v5, %v1586_v50  ;;  %v1589_v52 = vadd.f32 %v4211_v57, %v5762_v27  ;;  %v1717_v19 = vpop.f32.mrf.mxu0 }
 0x14a   : > { %v1445_v43 = vpop.f32.mrf.mxu1 }
 0x14b   : > { %v5963_v56 = vadd.f32 %v4261_v44, %v1589_v52  ;;  %v1588_v6 = vadd.f32 %v1445_v43, %v5771_v12  ;;  %v4264_v29 = vpop.f32.mrf.mxu0 }
 0x14c   : > { %v4214_v20 = vpop.f32.mrf.mxu1 }
 0x14d   : > { %v5966_v18 = vadd.f32 %v1717_v19, %v1588_v6  ;;  %v1591_v16 = vadd.f32 %v4214_v20, %v5776_v17  ;;  %v1727_v63 = vpop.f32.mrf.mxu0 }
 0x14e   : > { %v1455_v49 = vpop.f32.mrf.mxu1 }
 0x14f   : > { %v5969_v53 = vadd.f32 %v4264_v29, %v1591_v16  ;;  %v1590_v25 = vadd.f32 %v1455_v49, %v5785_v37  ;;  %v4267_v13 = vpop.f32.mrf.mxu0 }
 0x150   : > { %v4217_v27 = vpop.f32.mrf.mxu1 }
 0x151   : > { %v5972_v4 = vadd.f32 %v1727_v63, %v1590_v25  ;;  %v1593_v11 = vadd.f32 %v4217_v27, %v5790_v61  ;;  %v1737_v15 = vpop.f32.mrf.mxu0 }
 0x152   : > { %v1465_v12 = vpop.f32.mrf.mxu1 }
 0x153   : > { %v5975_v48 = vadd.f32 %v4267_v13, %v1593_v11  ;;  %v1592_v14 = vadd.f32 %v1465_v12, %v5799_v28  ;;  %v4270_v35 = vpop.f32.mrf.mxu0 }
 0x154   : > { %v4220_v17 = vpop.f32.mrf.mxu1 }
 0x155   : > { %v5978_v32 = vadd.f32 %v1737_v15, %v1592_v14  ;;  %v1595_v21 = vadd.f32 %v4220_v17, %v5804_v46  ;;  %v1747_v45 = vpop.f32.mrf.mxu0 }
 0x156   : > { %v1475_v37 = vpop.f32.mrf.mxu1 }
 0x157   : > { %v5981_v40 = vadd.f32 %v4270_v35, %v1595_v21  ;;  %v1594_v2 = vadd.f32 %v1475_v37, %v5813_v62  ;;  %v4273_v51 = vpop.f32.mrf.mxu0 }
 0x158   : > { %v4223_v61 = vpop.f32.mrf.mxu1 }
 0x159   : > { %v5984_v23 = vadd.f32 %v1747_v45, %v1594_v2  ;;  %v1597_v5 = vadd.f32 %v4223_v61, %v5818_v34  ;;  %v1757_v60 = vpop.f32.mrf.mxu0 }
 0x15a   : > { %v1485_v28 = vpop.f32.mrf.mxu1 }
 0x15b   : > { %v5987_v50 = vadd.f32 %v4273_v51, %v1597_v5  ;;  %v1596_v44 = vadd.f32 %v1485_v28, %v5827_v26  ;;  %v4276_v57 = vpop.f32.mrf.mxu0 }
 0x15c   : > { %v4226_v46 = vpop.f32.mrf.mxu1 }
 0x15d   : > { %v5990_v52 = vadd.f32 %v1757_v60, %v1596_v44  ;;  %v1599_v19 = vadd.f32 %v4226_v46, %v5832_v9  ;;  %v1767_v43 = vpop.f32.mrf.mxu0 }
 0x15e   : > { %v1495_v62 = vpop.f32.mrf.mxu1 }
 0x15f   : > { %v5993_v6 = vadd.f32 %v4276_v57, %v1599_v19  ;;  %v1598_v29 = vadd.f32 %v1495_v62, %v5841_v42  ;;  %v4279_v20 = vpop.f32.mrf.mxu0 }
 0x160   : > { %v4229_v34 = vpop.f32.mrf.mxu1 }
 0x161   : > { %v5996_v16 = vadd.f32 %v1767_v43, %v1598_v29  ;;  %v1601_v63 = vadd.f32 %v4229_v34, %v5846_v3  ;;  %v1777_v49 = vpop.f32.mrf.mxu0 }
 0x162   : > { %v1505_v26 = vpop.f32.mrf.mxu1 }
 0x163   : > { %v5999_v25 = vadd.f32 %v4279_v20, %v1601_v63  ;;  %v1600_v13 = vadd.f32 %v1505_v26, %v5855_v8  ;;  %v4282_v27 = vpop.f32.mrf.mxu0 }
 0x164   : > { %v4232_v9 = vpop.f32.mrf.mxu1 }
 0x165   : > { %v6002_v11 = vadd.f32 %v1777_v49, %v1600_v13  ;;  %v1603_v15 = vadd.f32 %v4232_v9, %v5860_v1  ;;  %v1787_v12 = vpop.f32.mrf.mxu0 }
 0x166   : > { %v1515_v42 = vpop.f32.mrf.mxu1 }
 0x167   : > { %v6005_v14 = vadd.f32 %v4282_v27, %v1603_v15  ;;  %v1602_v35 = vadd.f32 %v1515_v42, %v5869_v39  ;;  %v4285_v17 = vpop.f32.mrf.mxu0 }
 0x168   : > { %v4235_v3 = vpop.f32.mrf.mxu1 }
 0x169   : > { %6586 = vst [vmem:[#allocation41_spill] sm:$0xff] %v6005_v14  ;;  %v6008_v21 = vadd.f32 %v1787_v12, %v1602_v35  ;;  %v1605_v45 = vadd.f32 %v4235_v3, %v5874_v55  ;;  %v1797_v37 = vpop.f32.mrf.mxu0 }
 0x16a   : > { %v1525_v8 = vpop.f32.mrf.mxu1 }
 0x16b   : > { %6587 = vst [vmem:[#allocation42_spill] sm:$0xff] %v6008_v21  ;;  %v6011_v2 = vadd.f32 %v4285_v17, %v1605_v45  ;;  %v1604_v51 = vadd.f32 %v1525_v8, %v5883_v38  ;;  %v4288_v61 = vpop.f32.mrf.mxu0 }
 0x16c   : > { %v4238_v1 = vpop.f32.mrf.mxu1 }
 0x16d   : > { %6588 = vst [vmem:[#allocation43_spill] sm:$0xff] %v6011_v2  ;;  %v6014_v5 = vadd.f32 %v1797_v37, %v1604_v51  ;;  %v1607_v60 = vadd.f32 %v4238_v1, %v5888_v0  ;;  %v1807_v28 = vpop.f32.mrf.mxu0 }
 0x16e   : > { %v1535_v39 = vpop.f32.mrf.mxu1 }
 0x16f   : > { %6589 = vst [vmem:[#allocation44_spill] sm:$0xff] %v6014_v5  ;;  %v6017_v44 = vadd.f32 %v4288_v61, %v1607_v60  ;;  %v1606_v57 = vadd.f32 %v1535_v39, %v5899_v47  ;;  %v4291_v46 = vpop.f32.mrf.mxu0 }
 0x170   : > { %v4241_v55 = vpop.f32.mrf.mxu1 }
 0x171   : > { %6590 = vst [vmem:[#allocation45_spill] sm:$0xff] %v6017_v44  ;;  %v6020_v19 = vadd.f32 %v1807_v28, %v1606_v57  ;;  %v1609_v43 = vadd.f32 %v4241_v55, %v5907_v33  ;;  %v1817_v62 = vpop.f32.mrf.mxu0 }
 0x172   : > { %v1545_v38 = vpop.f32.mrf.mxu1 }
 0x173   : > { %6591 = vst [vmem:[#allocation46_spill] sm:$0xff] %v6020_v19  ;;  %v6023_v29 = vadd.f32 %v4291_v46, %v1609_v43  ;;  %v1608_v20 = vadd.f32 %v1545_v38, %v5916_v36  ;;  %v4294_v34 = vpop.f32.mrf.mxu0 }
 0x174   : > { %v4244_v0 = vpop.f32.mrf.mxu1 }
 0x175   : > { %6592 = vst [vmem:[#allocation47_spill] sm:$0xff] %v6023_v29  ;;  %v6026_v63 = vadd.f32 %v1817_v62, %v1608_v20  ;;  %v1611_v49 = vadd.f32 %v4244_v0, %v5923_v22  ;;  %v1827_v26 = vpop.f32.mrf.mxu0 }
 0x176   : > { %v1555_v47 = vpop.f32.mrf.mxu1 }
 0x177   : > { %6593 = vst [vmem:[#allocation19_spill] sm:$0xff] %v6026_v63  ;;  %v6029_v13 = vadd.f32 %v4294_v34, %v1611_v49  ;;  %v1610_v27 = vadd.f32 %v1555_v47, %v5932_v58  ;;  %v4297_v9 = vpop.f32.mrf.mxu0 }
 0x178   : > { %v4247_v33 = vpop.f32.mrf.mxu1 }
 0x179   : > { %6594 = vst [vmem:[#allocation24_spill] sm:$0xff] %v6029_v13  ;;  %v6032_v15 = vadd.f32 %v1827_v26, %v1610_v27  ;;  %v1613_v12 = vadd.f32 %v4247_v33, %v5937_v41  ;;  %v1837_v42 = vpop.f32.mrf.mxu0 }
 0x17a   : > { %v1565_v36 = vpop.f32.mrf.mxu1 }
 0x17b   : > { %6595 = vst [vmem:[#allocation27_spill] sm:$0xff] %v6032_v15  ;;  %v6035_v35 = vadd.f32 %v4297_v9, %v1613_v12  ;;  %v1612_v17 = vadd.f32 %v1565_v36, %v5942_v31  ;;  %v4300_v3 = vpop.f32.mrf.mxu0 }
 0x17c   : > { %v4250_v22 = vpop.f32.mrf.mxu1 }
 0x17d   : > { %6596 = vst [vmem:[#allocation29_spill] sm:$0xff] %v6035_v35  ;;  %v6038_v45 = vadd.f32 %v1837_v42, %v1612_v17  ;;  %v1615_v37 = vadd.f32 %v4250_v22, %v5945_v30  ;;  %v1847_v8 = vpop.f32.mrf.mxu0 }
 0x17e   : > { %v1575_v58 = vpop.f32.mrf.mxu1 }
 0x17f   : > { %6597 = vst [vmem:[#allocation31_spill] sm:$0xff] %v6038_v45  ;;  %v6041_v51 = vadd.f32 %v4300_v3, %v1615_v37  ;;  %v1614_v61 = vadd.f32 %v1575_v58, %v5948_v24  ;;  %v6044_v1 = vpop.f32.mrf.mxu0 }
 0x180   : > { %v4305_v41 = vpop.f32.mrf.mxu1 }
 0x181   : > { %6598 = vst [vmem:[#allocation33_spill] sm:$0xff] %v6041_v51  ;;  %v6046_v60 = vadd.f32 %v1847_v8, %v1614_v61  ;;  %v6048_v28 = vpop.f32.mrf.mxu0 }
 0x182   : > { %v1968_v31 = vpop.f32.mrf.mxu1 }
 0x183   : > { %6599 = vst [vmem:[#allocation35_spill] sm:$0xff] %v6046_v60  ;;  %v6050_v39 = vpop.f32.mrf.mxu0 }
 0x184   : > { %v4308_v57 = vpop.f32.mrf.mxu1 }
 0x185   : > { %v6052_v46 = vpop.f32.mrf.mxu0 }
 0x186   : > { %v6054_v30 = vpop.f32.mrf.mxu1 }
 0x187   : > { %v6056_v55 = vpop.f32.mrf.mxu0 }
 0x188   : > { %v6058_v43 = vpop.f32.mrf.mxu1 }
 0x189   : > { %v6060_v24 = vpop.f32.mrf.mxu0 }
 0x18a   : > { %v6062_v62 = vpop.f32.mrf.mxu1 }
 0x18b   : > { %v6064_v38 = vpop.f32.mrf.mxu0 }
 0x18c   : > { %v6066_v20 = vpop.f32.mrf.mxu1 }
 0x18d   : > { %v6068_v34 = vpop.f32.mrf.mxu0 }
 0x18e   : > { %v6070_v0 = vpop.f32.mrf.mxu1 }
 0x18f   : > { %v6072_v49 = vpop.f32.mrf.mxu0 }
 0x190   : > { %v6074_v26 = vpop.f32.mrf.mxu1 }
 0x191   : > { %v6076_v47 = vpop.f32.mrf.mxu0 }
 0x192   : > { %v6078_v27 = vpop.f32.mrf.mxu1 }
 0x193   : > { %v6080_v9 = vpop.f32.mrf.mxu0 }
 0x194   : > { %v6082_v33 = vpop.f32.mrf.mxu1 }
 0x195   : > { %v6084_v12 = vpop.f32.mrf.mxu0 }
 0x196   : > { %v6086_v42 = vpop.f32.mrf.mxu1 }
 0x197   : > { %v6088_v36 = vpop.f32.mrf.mxu0 }
 0x198   : > { %v6090_v17 = vpop.f32.mrf.mxu1 }
 0x199   : > { %v6092_v3 = vpop.f32.mrf.mxu0 }
 0x19a   : > { %v6094_v22 = vpop.f32.mrf.mxu1 }
 0x19b   : > { %v6096_v37 = vpop.f32.mrf.mxu0 }
 0x19c   : > { %v6098_v8 = vpop.f32.mrf.mxu1 }
 0x19d   : > { %v6100_v58 = vpop.f32.mrf.mxu0 }
 0x19e   : > { %v6102_v61 = vpop.f32.mrf.mxu1 }
 0x19f   : > { %v6104_v60 = vpop.f32.mrf.mxu0 }
 0x1a0   : > { %v6106_v51 = vpop.f32.mrf.mxu1 }
 0x1a1   : > { %v6108_v45 = vpop.f32.mrf.mxu0 }
 0x1a2   : > { %6600 = vst [vmem:[#allocation5_spill] sm:$0xff] %v6108_v45  ;;  %v6110_v35 = vpop.f32.mrf.mxu1 }
 0x1a3   : > { %v6112_v15 = vpop.f32.mrf.mxu0 }
 0x1a4   : > { %6601 = vst [vmem:[#allocation6_spill] sm:$0xff] %v6112_v15  ;;  %v6114_v13 = vpop.f32.mrf.mxu1 }
 0x1a5   : > { %6602 = vst [vmem:[#allocation8_spill] sm:$0xff] %v6114_v13  ;;  %v6116_v63 = vpop.f32.mrf.mxu0 }
 0x1a6   : > { %6603 = vst [vmem:[#allocation10_spill] sm:$0xff] %v6116_v63  ;;  %v6118_v29 = vpop.f32.mrf.mxu1 }
 0x1a7   : > { %6604 = vst [vmem:[#allocation12_spill] sm:$0xff] %v6118_v29  ;;  %v6120_v19 = vpop.f32.mrf.mxu0 }
 0x1a8   : > { %6605 = vst [vmem:[#allocation14_spill] sm:$0xff] %v6120_v19  ;;  %v6122_v44 = vpop.f32.mrf.mxu1 }
 0x1a9   : > { %6606 = vst [vmem:[#allocation16_spill] sm:$0xff] %v6122_v44  ;;  %v6124_v5 = vpop.f32.mrf.mxu0 }
 0x1aa   : > { %6607 = vst [vmem:[#allocation18_spill] sm:$0xff] %v6124_v5  ;;  %v6126_v2 = vpop.f32.mrf.mxu1 }
 0x1ab   : > { %6608 = vst [vmem:[#allocation20_spill] sm:$0xff] %v6126_v2  ;;  %v6128_v21 = vpop.f32.mrf.mxu0 }
 0x1ac   : > { %6609 = vst [vmem:[#allocation23_spill] sm:$0xff] %v6128_v21  ;;  %v6130_v45 = vpop.f32.mrf.mxu1 }
 0x1ad   : > { %6610 = vst [vmem:[#allocation25_spill] sm:$0xff] %v6130_v45  ;;  %v6132_v14 = vpop.f32.mrf.mxu0 }
 0x1ae   : > { %6611 = vst [vmem:[#allocation28_spill] sm:$0xff] %v6132_v14  ;;  %v6134_v15 = vpop.f32.mrf.mxu1 }
 0x1af   : > { %6612 = vst [vmem:[#allocation30_spill] sm:$0xff] %v6134_v15  ;;  %v6136_v13 = vpop.f32.mrf.mxu0 }
 0x1b0   : > { %6613 = vst [vmem:[#allocation32_spill] sm:$0xff] %v6136_v13  ;;  %v6138_v63 = vpop.f32.mrf.mxu1 }
 0x1b1   : > { %6614 = vst [vmem:[#allocation9_spill] sm:$0xff] %v6138_v63  ;;  %v6140_v29 = vpop.f32.mrf.mxu0 }
 0x1b2   : > { %6615 = vst [vmem:[#allocation34_spill] sm:$0xff] %v6140_v29  ;;  %v6142_v19 = vpop.f32.mrf.mxu1  ;;  %v2128_v29 = vadd.f32 %v4305_v41, %v5951_v10  ;;  %v2129_v10 = vadd.f32 %v6054_v30, %v5960_v7 }
 0x1b3   : > { %6616 = vst [vmem:[#allocation11_spill] sm:$0xff] %v6142_v19  ;;  %v6144_v44 = vpop.f32.mrf.mxu0 }
 0x1b4   : > { %6617 = vst [vmem:[#allocation21_spill] sm:$0xff] %v6144_v44  ;;  %v6146_v5 = vpop.f32.mrf.mxu1  ;;  %v2127_v44 = vadd.f32 %v1968_v31, %v5954_v59  ;;  %v2132_v59 = vadd.f32 %v6058_v43, %v5963_v56  ;;  %v6180_v31 = vld [vmem:[%s6372_s2] ss:$0 sm:$0xff]  ;;  %v2397_v7 = vadd.f32 %v6052_v46, %v2129_v10 }
 0x1b5   : > { %6618 = vst [vmem:[#allocation36_spill] sm:$0xff] %v6146_v5  ;;  %v6148_v2 = vpop.f32.mrf.mxu0 }
 0x1b6   : > { %6619 = vst [vmem:[#allocation17_spill] sm:$0xff] %v6148_v2  ;;  %v6150_v21 = vpop.f32.mrf.mxu1  ;;  %v2400_v43 = vadd.f32 %v6056_v55, %v2132_v59 }
 0x1b7   : > { %6620 = vst [vmem:[#allocation13_spill] sm:$0xff] %v6150_v21  ;;  %v6152_v45 = vpop.f32.mrf.mxu0 }
 0x1b8   : > { %6621 = vst [vmem:[#allocation26_spill] sm:$0xff] %v6152_v45  ;;  %v6154_v14 = vpop.f32.mrf.mxu1  ;;  %v2396_v45 = vadd.f32 %v6044_v1, %v2128_v29 }
 0x1b9   : > { %6622 = vst [vmem:[#allocation15_spill] sm:$0xff] %v6154_v14  ;;  %v6156_v15 = vpop.f32.mrf.mxu0  ;;  %v2130_v14 = vadd.f32 %v4308_v57, %v5957_v54 }
 0x1ba   : > { %6623 = vst [vmem:[#allocation37_spill] sm:$0xff] %v6156_v15  ;;  %v6158_v13 = vpop.f32.mrf.mxu1 }
 0x1bb   : > { %6624 = vst [vmem:[#allocation7_spill] sm:$0xff] %v6158_v13  ;;  %v6161_v63 = vpop.f32.mrf.mxu0  ;;  %v2395_v13 = vadd.f32 %v6048_v28, %v2127_v44  ;;  %v2398_v54 = vadd.f32 %v6050_v39, %v2130_v14  ;;  %v2134_v14 = vadd.f32 %v6066_v20, %v5969_v53  ;;  %v2136_v20 = vadd.f32 %v6074_v26, %v5975_v48 }
 0x1bc   : > { %6625 = vst [vmem:[#allocation22_spill] sm:$0xff] %v6161_v63  ;;  %v6163_v19 = vpop.f32.mrf.mxu1 }
 0x1bd   : > { %v6166_v5 = vpop.f32.mrf.mxu0  ;;  %v2404_v26 = vadd.f32 %v6072_v49, %v2136_v20  ;;  %v2139_v20 = vadd.f32 %v6094_v22, %v5990_v52 }
 0x1be   : > { %6626 = vst [vmem:[#allocation38_spill] sm:$0xff] %v6166_v5  ;;  %v6168_v2 = vpop.f32.mrf.mxu1  ;;  %v2131_v5 = vadd.f32 %v6062_v62, %v5966_v18 }
 0x1bf   : > { %6627 = vst [vmem:[#allocation39_spill] sm:$0xff] %v6168_v2  ;;  %v4455_v15 = vpop.f32.mrf.mxu0 }
 0x1c0   : > { %v4405_v21 = vpop.f32.mrf.mxu1  ;;  %v2399_v53 = vadd.f32 %v6060_v24, %v2131_v5 }
 0x1c1   : > { %v2668_v41 = vadd.f32 %v4405_v21, %v2396_v45  ;;  %v2779_v63 = vpop.f32.mrf.mxu0 }
 0x1c2   : > { %v2508_v29 = vpop.f32.mrf.mxu1 }
 0x1c3   : > { %v2939_v1 = vadd.f32 %v4455_v15, %v2668_v41  ;;  %v2667_v57 = vadd.f32 %v2508_v29, %v2395_v13  ;;  %v4458_v44 = vpop.f32.mrf.mxu0 }
 0x1c4   : > { %v4408_v28 = vpop.f32.mrf.mxu1 }
 0x1c5   : > { %v2978_v21 = vadd.f32 %v6180_v31, %v2939_v1  ;;  %v2938_v45 = vadd.f32 %v2779_v63, %v2667_v57  ;;  %v2670_v56 = vadd.f32 %v4408_v28, %v2398_v54  ;;  %v2789_v30 = vpop.f32.mrf.mxu0  ;;  %v2133_v63 = vadd.f32 %v6070_v0, %v5972_v4 }
 0x1c6   : > { %v2518_v2 = vpop.f32.mrf.mxu1 }
 0x1c7   : > { %v2977_v13 = vadd.f32 %v6180_v31, %v2938_v45  ;;  %v2941_v15 = vadd.f32 %v4458_v44, %v2670_v56  ;;  %v2669_v39 = vadd.f32 %v2518_v2, %v2397_v7  ;;  %v4461_v46 = vpop.f32.mrf.mxu0  ;;  %v3010_v10 = vmax.f32 %v2978_v21, 0.0 }
 0x1c8   : > { %v4411_v41 = vpop.f32.mrf.mxu1  ;;  %v2402_v2 = vadd.f32 %v6064_v38, %v2134_v14  ;;  %v2401_v44 = vadd.f32 %v6068_v34, %v2133_v63  ;;  %v2135_v21 = vadd.f32 %v6078_v27, %v5978_v32 }
 0x1c9   : > { %v3009_v55 = vmax.f32 %v2977_v13, 0.0  ;;  %v2980_v59 = vadd.f32 %v6180_v31, %v2941_v15  ;;  %v2940_v18 = vadd.f32 %v2789_v30, %v2669_v39  ;;  %v2672_v62 = vadd.f32 %v4411_v41, %v2400_v43  ;;  %v2799_v29 = vpop.f32.mrf.mxu0 }
 0x1ca   : > { %v2528_v54 = vpop.f32.mrf.mxu1  ;;  %v2138_v30 = vadd.f32 %v6082_v33, %v5981_v40  ;;  %v2403_v39 = vadd.f32 %v6076_v47, %v2135_v21  ;;  %v2137_v41 = vadd.f32 %v6086_v42, %v5984_v23  ;;  %v2140_v40 = vadd.f32 %v6090_v17, %v5987_v50 }
 0x1cb   : > { %v3662_v1 = vpack.c.bf16 %v3010_v10, %v3009_v55  ;;  %v2979_v57 = vadd.f32 %v6180_v31, %v2940_v18  ;;  %v2943_v4 = vadd.f32 %v4461_v46, %v2672_v62  ;;  %v4464_v0 = vpop.f32.mrf.mxu0  ;;  %v2671_v28 = vadd.f32 %v2528_v54, %v2399_v53 }
 0x1cc   : > { %v4414_v7 = vpop.f32.mrf.mxu1  ;;  %v3012_v48 = vmax.f32 %v2980_v59, 0.0  ;;  %v2406_v18 = vadd.f32 %v6080_v9, %v2138_v30  ;;  %v2405_v9 = vadd.f32 %v6084_v12, %v2137_v41  ;;  %v2407_v21 = vadd.f32 %v6092_v3, %v2139_v20 }
 0x1cd   : > { %3663 = vst [vmem:[%s6205_s6] sm:$0xff] %v3662_v1   ;;  %v3011_v5 = vmax.f32 %v2979_v57, 0.0  ;;  %v2674_v24 = vadd.f32 %v4414_v7, %v2402_v2  ;;  %v2809_v38 = vpop.f32.mrf.mxu0  ;;  %v2982_v45 = vadd.f32 %v6180_v31, %v2943_v4  ;;  %v2942_v56 = vadd.f32 %v2799_v29, %v2671_v28 }
 0x1ce   : > { %v2538_v34 = vpop.f32.mrf.mxu1  ;;  %v2408_v4 = vadd.f32 %v6088_v36, %v2140_v40 }
 0x1cf   : > { %v3667_v43 = vpack.c.bf16 %v3012_v48, %v3011_v5  ;;  %v2945_v32 = vadd.f32 %v4464_v0, %v2674_v24  ;;  %v2673_v27 = vadd.f32 %v2538_v34, %v2401_v44  ;;  %v4467_v14 = vpop.f32.mrf.mxu0  ;;  %v2981_v13 = vadd.f32 %v6180_v31, %v2942_v56 }
 0x1d0   : > { %v4417_v15 = vpop.f32.mrf.mxu1  ;;  %v3014_v33 = vmax.f32 %v2982_v45, 0.0  ;;  %v2142_v44 = vadd.f32 %v6098_v8, %v5993_v6  ;;  %v2141_v24 = vadd.f32 %v6102_v61, %v5996_v16  ;;  %v2144_v6 = vadd.f32 %v6106_v51, %v5999_v25 }
 0x1d1   : > { %3739 = vst [vmem:[%s6205_s6 + $0x8] sm:$0xff] %v3667_v43   ;;  %v2984_v46 = vadd.f32 %v6180_v31, %v2945_v32  ;;  %v2944_v49 = vadd.f32 %v2809_v38, %v2673_v27  ;;  %v2676_v63 = vadd.f32 %v4417_v15, %v2404_v26  ;;  %v2819_v10 = vpop.f32.mrf.mxu0  ;;  %v3013_v55 = vmax.f32 %v2981_v13, 0.0 }
 0x1d2   : > { %v2548_v59 = vpop.f32.mrf.mxu1  ;;  %v2410_v3 = vadd.f32 %v6096_v37, %v2142_v44  ;;  %v2409_v27 = vadd.f32 %v6100_v58, %v2141_v24  ;;  %v2412_v15 = vadd.f32 %v6104_v60, %v2144_v6  ;;  %v2143_v37 = vadd.f32 %v6110_v35, %v6002_v11  ;;  %v6639_v6 = vld [vmem:[#allocation14_spill] sm:$0xff] }
 0x1d3   : > { %v2983_v47 = vadd.f32 %v6180_v31, %v2944_v49  ;;  %v2947_v62 = vadd.f32 %v4467_v14, %v2676_v63  ;;  %v2675_v29 = vadd.f32 %v2548_v59, %v2403_v39  ;;  %v4470_v53 = vpop.f32.mrf.mxu0  ;;  %v3672_v54 = vpack.c.bf16 %v3014_v33, %v3013_v55  ;;  %v6628_v63 = vld [vmem:[#allocation41_spill] sm:$0xff]  ;;  %v6630_v59 = vld [vmem:[#allocation42_spill] sm:$0xff] }
 0x1d4   : > { %v3016_v2 = vmax.f32 %v2984_v46, 0.0  ;;  %v4420_v23 = vpop.f32.mrf.mxu1 }
 0x1d5   : > { %v3015_v42 = vmax.f32 %v2983_v47, 0.0  ;;  %v2986_v50 = vadd.f32 %v6180_v31, %v2947_v62  ;;  %v2946_v17 = vadd.f32 %v2819_v10, %v2675_v29  ;;  %v2678_v1 = vadd.f32 %v4420_v23, %v2406_v18  ;;  %v2829_v57 = vpop.f32.mrf.mxu0  ;;  %3740 = vst [vmem:[%s6205_s6 + $0x10] sm:$0xff] %v3672_v54   ;;  %v6629_v10 = vld [vmem:[#allocation8_spill] sm:$0xff] }
 0x1d6   : > { %v2558_v0 = vpop.f32.mrf.mxu1  ;;  %v2146_v41 = vadd.f32 %v6629_v10, %v6628_v63  ;;  %v6631_v18 = vld [vmem:[#allocation12_spill] sm:$0xff]  ;;  %v6644_v63 = vld [vmem:[#allocation30_spill] sm:$0xff] }
 0x1d7   : > { %v3677_v52 = vpack.c.bf16 %v3016_v2, %v3015_v42  ;;  %v2985_v22 = vadd.f32 %v6180_v31, %v2946_v17  ;;  %v2949_v28 = vadd.f32 %v4470_v53, %v2678_v1  ;;  %v4473_v7 = vpop.f32.mrf.mxu0  ;;  %v2677_v48 = vadd.f32 %v2558_v0, %v2405_v9  ;;  %v6632_v2 = vld [vmem:[#allocation5_spill] sm:$0xff]  ;;  %v6633_v42 = vld [vmem:[#allocation43_spill] sm:$0xff] }
 0x1d8   : > { %v4423_v5 = vpop.f32.mrf.mxu1  ;;  %v3018_v12 = vmax.f32 %v2986_v50, 0.0  ;;  %v2145_v47 = vadd.f32 %v6631_v18, %v6630_v59  ;;  %v2411_v23 = vadd.f32 %v6632_v2, %v2143_v37  ;;  %v6634_v50 = vld [vmem:[#allocation16_spill] sm:$0xff]  ;;  %v6647_v18 = vld [vmem:[#allocation23_spill] sm:$0xff] }
 0x1d9   : > { %3741 = vst [vmem:[%s6205_s6 + $0x18] sm:$0xff] %v3677_v52   ;;  %v3017_v36 = vmax.f32 %v2985_v22, 0.0  ;;  %v2680_v38 = vadd.f32 %v4423_v5, %v2408_v4  ;;  %v2839_v26 = vpop.f32.mrf.mxu0  ;;  %v2988_v8 = vadd.f32 %v6180_v31, %v2949_v28  ;;  %v2948_v45 = vadd.f32 %v2829_v57, %v2677_v48  ;;  %v6635_v57 = vld [vmem:[#allocation6_spill] sm:$0xff]  ;;  %v6637_v48 = vld [vmem:[#allocation44_spill] sm:$0xff] }
 0x1da   : > { %v2568_v56 = vpop.f32.mrf.mxu1  ;;  %v2148_v17 = vadd.f32 %v6634_v50, %v6633_v42  ;;  %v2414_v9 = vadd.f32 %v6635_v57, %v2146_v41  ;;  %v6636_v22 = vld [vmem:[#allocation10_spill] sm:$0xff]  ;;  %v6638_v5 = vld [vmem:[#allocation20_spill] sm:$0xff]  ;;  %v6645_v41 = vld [vmem:[#allocation47_spill] sm:$0xff] }
 0x1db   : > { %v3682_v34 = vpack.c.bf16 %v3018_v12, %v3017_v36  ;;  %v2951_v30 = vadd.f32 %v4473_v7, %v2680_v38  ;;  %v2679_v43 = vadd.f32 %v2568_v56, %v2407_v21  ;;  %v4476_v32 = vpop.f32.mrf.mxu0  ;;  %v2987_v16 = vadd.f32 %v6180_v31, %v2948_v45 }
 0x1dc   : > { %v4426_v61 = vpop.f32.mrf.mxu1  ;;  %v3020_v39 = vmax.f32 %v2988_v8, 0.0  ;;  %v2413_v28 = vadd.f32 %v6636_v22, %v2145_v47  ;;  %v2147_v24 = vadd.f32 %v6638_v5, %v6637_v48  ;;  %v2416_v8 = vadd.f32 %v6639_v6, %v2148_v17  ;;  %v6652_v22 = vld [vmem:[#allocation24_spill] sm:$0xff]  ;;  %v6655_v6 = vld [vmem:[#allocation27_spill] sm:$0xff] }
 0x1dd   : > { %3742 = vst [vmem:[%s6205_s6 + $0x20] sm:$0xff] %v3682_v34   ;;  %v2990_v14 = vadd.f32 %v6180_v31, %v2951_v30  ;;  %v2950_v13 = vadd.f32 %v2839_v26, %v2679_v43  ;;  %v2682_v25 = vadd.f32 %v4426_v61, %v2410_v3  ;;  %v2849_v51 = vpop.f32.mrf.mxu0  ;;  %v3019_v46 = vmax.f32 %v2987_v16, 0.0  ;;  %v6640_v34 = vld [vmem:[#allocation45_spill] sm:$0xff] }
 0x1de   : > { %v2578_v49 = vpop.f32.mrf.mxu1  ;;  %v6641_v30 = vld [vmem:[#allocation25_spill] sm:$0xff] }
 0x1df   : > { %v2989_v58 = vadd.f32 %v6180_v31, %v2950_v13  ;;  %v2953_v40 = vadd.f32 %v4476_v32, %v2682_v25  ;;  %v2681_v33 = vadd.f32 %v2578_v49, %v2409_v27  ;;  %v4479_v55 = vpop.f32.mrf.mxu0  ;;  %v3687_v62 = vpack.c.bf16 %v3020_v39, %v3019_v46  ;;  %v6642_v25 = vld [vmem:[#allocation18_spill] sm:$0xff] }
 0x1e0   : > { %v3022_v60 = vmax.f32 %v2990_v14, 0.0  ;;  %v4429_v29 = vpop.f32.mrf.mxu1  ;;  %v2150_v43 = vadd.f32 %v6641_v30, %v6640_v34  ;;  %v6643_v49 = vld [vmem:[#allocation46_spill] sm:$0xff] }
 0x1e1   : > { %v3021_v53 = vmax.f32 %v2989_v58, 0.0  ;;  %v2992_v11 = vadd.f32 %v6180_v31, %v2953_v40  ;;  %v2952_v35 = vadd.f32 %v2849_v51, %v2681_v33  ;;  %v2684_v20 = vadd.f32 %v4429_v29, %v2412_v15  ;;  %v2859_v54 = vpop.f32.mrf.mxu0  ;;  %3743 = vst [vmem:[%s6205_s6 + $0x28] sm:$0xff] %v3687_v62   ;;  %v6646_v58 = vld [vmem:[#allocation9_spill] sm:$0xff] }
 0x1e2   : > { %v2588_v1 = vpop.f32.mrf.mxu1  ;;  %v2415_v51 = vadd.f32 %v6642_v25, %v2147_v24  ;;  %v2149_v10 = vadd.f32 %v6644_v63, %v6643_v49  ;;  %v2152_v40 = vadd.f32 %v6646_v58, %v6645_v41  ;;  %v2418_v47 = vadd.f32 %v6647_v18, %v2150_v43  ;;  %v6657_v43 = vld [vmem:[#allocation29_spill] sm:$0xff]  ;;  %v6662_v18 = vld [vmem:[#allocation31_spill] sm:$0xff] }
 0x1e3   : > { %v3692_v4 = vpack.c.bf16 %v3022_v60, %v3021_v53  ;;  %v2991_v0 = vadd.f32 %v6180_v31, %v2952_v35  ;;  %v2955_v44 = vadd.f32 %v4479_v55, %v2684_v20  ;;  %v4482_v52 = vpop.f32.mrf.mxu0  ;;  %v2683_v7 = vadd.f32 %v2588_v1, %v2411_v23  ;;  %v6649_v35 = vld [vmem:[#allocation11_spill] sm:$0xff]  ;;  %v6660_v63 = vld [vmem:[#allocation17_spill] sm:$0xff] }
 0x1e4   : > { %v4432_v21 = vpop.f32.mrf.mxu1  ;;  %v3024_v12 = vmax.f32 %v2992_v11, 0.0  ;;  %v6648_v11 = vld [vmem:[#allocation19_spill] sm:$0xff] }
 0x1e5   : > { %3744 = vst [vmem:[%s6205_s6 + $0x30] sm:$0xff] %v3692_v4   ;;  %v3023_v36 = vmax.f32 %v2991_v0, 0.0  ;;  %v2686_v38 = vadd.f32 %v4432_v21, %v2414_v9  ;;  %v2869_v26 = vpop.f32.mrf.mxu0  ;;  %v2994_v45 = vadd.f32 %v6180_v31, %v2955_v44  ;;  %v2954_v56 = vadd.f32 %v2859_v54, %v2683_v7  ;;  %v6650_v9 = vld [vmem:[#allocation28_spill] sm:$0xff] }
 0x1e6   : > { %v2598_v3 = vpop.f32.mrf.mxu1  ;;  %v2151_v20 = vadd.f32 %v6649_v35, %v6648_v11  ;;  %v2417_v4 = vadd.f32 %v6650_v9, %v2149_v10  ;;  %v6651_v0 = vld [vmem:[#allocation32_spill] sm:$0xff]  ;;  %v6664_v11 = vld [vmem:[#allocation33_spill] sm:$0xff] }
 0x1e7   : > { %v3697_v32 = vpack.c.bf16 %v3024_v12, %v3023_v36  ;;  %v2957_v16 = vadd.f32 %v4482_v52, %v2686_v38  ;;  %v2685_v61 = vadd.f32 %v2598_v3, %v2413_v28  ;;  %v4485_v27 = vpop.f32.mrf.mxu0  ;;  %v2993_v14 = vadd.f32 %v6180_v31, %v2954_v56  ;;  %v6653_v28 = vld [vmem:[#allocation36_spill] sm:$0xff]  ;;  %v6654_v12 = vld [vmem:[#allocation34_spill] sm:$0xff] }
 0x1e8   : > { %v4435_v13 = vpop.f32.mrf.mxu1  ;;  %v3026_v33 = vmax.f32 %v2994_v45, 0.0  ;;  %v2420_v44 = vadd.f32 %v6651_v0, %v2152_v40  ;;  %v2154_v7 = vadd.f32 %v6653_v28, %v6652_v22  ;;  %v2419_v36 = vadd.f32 %v6654_v12, %v2151_v20  ;;  %v6667_v28 = vld [vmem:[#allocation37_spill] sm:$0xff] }
 0x1e9   : > { %3745 = vst [vmem:[%s6205_s6 + $0x38] sm:$0xff] %v3697_v32   ;;  %v2996_v15 = vadd.f32 %v6180_v31, %v2957_v16  ;;  %v2956_v37 = vadd.f32 %v2869_v26, %v2685_v61  ;;  %v2688_v39 = vadd.f32 %v4435_v13, %v2416_v8  ;;  %v2879_v46 = vpop.f32.mrf.mxu0  ;;  %v3025_v55 = vmax.f32 %v2993_v14, 0.0  ;;  %v6656_v8 = vld [vmem:[#allocation13_spill] sm:$0xff]  ;;  %v6658_v32 = vld [vmem:[#allocation15_spill] sm:$0xff] }
 0x1ea   : > { %v2608_v59 = vpop.f32.mrf.mxu1  ;;  %v2153_v45 = vadd.f32 %v6656_v8, %v6655_v6  ;;  %v2156_v16 = vadd.f32 %v6658_v32, %v6657_v43  ;;  %v6659_v13 = vld [vmem:[#allocation21_spill] sm:$0xff]  ;;  %v2158_v35 = vadd.f32 %v6163_v19, %v6664_v11  ;;  %v6669_v6 = vld [vmem:[#allocation38_spill] sm:$0xff] }
 0x1eb   : > { %v2995_v62 = vadd.f32 %v6180_v31, %v2956_v37  ;;  %v2959_v60 = vadd.f32 %v4485_v27, %v2688_v39  ;;  %v2687_v29 = vadd.f32 %v2608_v59, %v2415_v51  ;;  %v4488_v53 = vpop.f32.mrf.mxu0  ;;  %v3702_v54 = vpack.c.bf16 %v3026_v33, %v3025_v55  ;;  %v6661_v55 = vld [vmem:[#allocation26_spill] sm:$0xff] }
 0x1ec   : > { %v3028_v2 = vmax.f32 %v2996_v15, 0.0  ;;  %v4438_v23 = vpop.f32.mrf.mxu1  ;;  %v2422_v25 = vadd.f32 %v6659_v13, %v2154_v7  ;;  %v2421_v10 = vadd.f32 %v6660_v63, %v2153_v45  ;;  %v2424_v59 = vadd.f32 %v6661_v55, %v2156_v16 }
 0x1ed   : > { %v3027_v42 = vmax.f32 %v2995_v62, 0.0  ;;  %v2998_v50 = vadd.f32 %v6180_v31, %v2959_v60  ;;  %v2958_v17 = vadd.f32 %v2879_v46, %v2687_v29  ;;  %v2690_v1 = vadd.f32 %v4438_v23, %v2418_v47  ;;  %v2889_v57 = vpop.f32.mrf.mxu0  ;;  %3746 = vst [vmem:[%s6205_s6 + $0x40] sm:$0xff] %v3702_v54   ;;  %v6663_v47 = vld [vmem:[#allocation7_spill] sm:$0xff] }
 0x1ee   : > { %v2618_v52 = vpop.f32.mrf.mxu1  ;;  %v2155_v62 = vadd.f32 %v6663_v47, %v6662_v18 }
 0x1ef   : > { %v3707_v21 = vpack.c.bf16 %v3028_v2, %v3027_v42  ;;  %v2997_v48 = vadd.f32 %v6180_v31, %v2958_v17  ;;  %v2961_v5 = vadd.f32 %v4488_v53, %v2690_v1  ;;  %v4491_v24 = vpop.f32.mrf.mxu0  ;;  %v2689_v38 = vadd.f32 %v2618_v52, %v2417_v4  ;;  %v6665_v42 = vld [vmem:[#allocation35_spill] sm:$0xff] }
 0x1f0   : > { %v4441_v26 = vpop.f32.mrf.mxu1  ;;  %v3030_v56 = vmax.f32 %v2998_v50, 0.0  ;;  %v6666_v50 = vld [vmem:[#allocation39_spill] sm:$0xff]  ;;  %v2423_v19 = vadd.f32 %v6667_v28, %v2155_v62 }
 0x1f1   : > { %3747 = vst [vmem:[%s6205_s6 + $0x48] sm:$0xff] %v3707_v21   ;;  %v3029_v3 = vmax.f32 %v2997_v48, 0.0  ;;  %v2692_v34 = vadd.f32 %v4441_v26, %v2420_v44  ;;  %v2899_v30 = vpop.f32.mrf.mxu0  ;;  %v3000_v61 = vadd.f32 %v6180_v31, %v2961_v5  ;;  %v2960_v27 = vadd.f32 %v2889_v57, %v2689_v38  ;;  %v6668_v21 = vld [vmem:[#allocation22_spill] sm:$0xff] }
 0x1f2   : > { %v2628_v14 = vpop.f32.mrf.mxu1  ;;  %v2157_v17 = vadd.f32 %v6666_v50, %v6665_v42  ;;  %v2426_v48 = vadd.f32 %v6668_v21, %v2158_v35 }
 0x1f3   : > { %v3712_v51 = vpack.c.bf16 %v3030_v56, %v3029_v3  ;;  %v2963_v15 = vadd.f32 %v4491_v24, %v2692_v34  ;;  %v2691_v37 = vadd.f32 %v2628_v14, %v2419_v36  ;;  %v4494_v39 = vpop.f32.mrf.mxu0  ;;  %v2999_v46 = vadd.f32 %v6180_v31, %v2960_v27 }
 0x1f4   : > { %v4444_v49 = vpop.f32.mrf.mxu1  ;;  %v3032_v60 = vmax.f32 %v3000_v61, 0.0  ;;  %v2425_v8 = vadd.f32 %v6669_v6, %v2157_v17 }
 0x1f5   : > { %3748 = vst [vmem:[%s6205_s6 + $0x50] sm:$0xff] %v3712_v51   ;;  %v3002_v41 = vadd.f32 %v6180_v31, %v2963_v15  ;;  %v2962_v58 = vadd.f32 %v2899_v30, %v2691_v37  ;;  %v2694_v40 = vadd.f32 %v4444_v49, %v2422_v25  ;;  %v2909_v33 = vpop.f32.mrf.mxu0  ;;  %v3031_v29 = vmax.f32 %v2999_v46, 0.0 }
 0x1f6   : > { %v2638_v53 = vpop.f32.mrf.mxu1 }
 0x1f7   : > { %v3001_v20 = vadd.f32 %v6180_v31, %v2962_v58  ;;  %v2965_v54 = vadd.f32 %v4494_v39, %v2694_v40  ;;  %v2693_v2 = vadd.f32 %v2638_v53, %v2421_v10  ;;  %v4497_v23 = vpop.f32.mrf.mxu0  ;;  %v3717_v1 = vpack.c.bf16 %v3032_v60, %v3031_v29 }
 0x1f8   : > { %v3034_v57 = vmax.f32 %v3002_v41, 0.0  ;;  %v4447_v9 = vpop.f32.mrf.mxu1 }
 0x1f9   : > { %v3033_v4 = vmax.f32 %v3001_v20, 0.0  ;;  %v3004_v0 = vadd.f32 %v6180_v31, %v2965_v54  ;;  %v2964_v44 = vadd.f32 %v2909_v33, %v2693_v2  ;;  %v2696_v52 = vadd.f32 %v4447_v9, %v2424_v59  ;;  %v2919_v22 = vpop.f32.mrf.mxu0  ;;  %3749 = vst [vmem:[%s6205_s6 + $0x58] sm:$0xff] %v3717_v1  }
 0x1fa   : > { %v2648_v7 = vpop.f32.mrf.mxu1 }
 0x1fb   : > { %v3722_v5 = vpack.c.bf16 %v3034_v57, %v3033_v4  ;;  %v3003_v24 = vadd.f32 %v6180_v31, %v2964_v44  ;;  %v2967_v12 = vadd.f32 %v4497_v23, %v2696_v52  ;;  %v2695_v36 = vadd.f32 %v2648_v7, %v2423_v19  ;;  %v4500_v26 = vpop.f32.mrf.mxu0 }
 0x1fc   : > { %v4450_v38 = vpop.f32.mrf.mxu1  ;;  %v3036_v45 = vmax.f32 %v3004_v0, 0.0 }
 0x1fd   : > { %3750 = vst [vmem:[%s6205_s6 + $0x60] sm:$0xff] %v3722_v5   ;;  %v3035_v56 = vmax.f32 %v3003_v24, 0.0  ;;  %v2698_v3 = vadd.f32 %v4450_v38, %v2426_v48  ;;  %v3006_v34 = vadd.f32 %v6180_v31, %v2967_v12  ;;  %v2966_v30 = vadd.f32 %v2919_v22, %v2695_v36  ;;  %v2929_v14 = vpop.f32.mrf.mxu0 }
 0x1fe   : > { %v2658_v43 = vpop.f32.mrf.mxu1 }
 0x1ff   : > { %v3727_v32 = vpack.c.bf16 %v3036_v45, %v3035_v56  ;;  %v2969_v16 = vadd.f32 %v4500_v26, %v2698_v3  ;;  %v2697_v61 = vadd.f32 %v2658_v43, %v2425_v8  ;;  %v3005_v27 = vadd.f32 %v6180_v31, %v2966_v30 }
 0x200   : > { %v3038_v51 = vmax.f32 %v3006_v34, 0.0 }
 0x201   : > { %3751 = vst [vmem:[%s6205_s6 + $0x68] sm:$0xff] %v3727_v32   ;;  %v3008_v13 = vadd.f32 %v6180_v31, %v2969_v16  ;;  %v2968_v25 = vadd.f32 %v2929_v14, %v2697_v61  ;;  %v3037_v15 = vmax.f32 %v3005_v27, 0.0 }
 0x203   : > { %v3007_v37 = vadd.f32 %v6180_v31, %v2968_v25  ;;  %v3732_v39 = vpack.c.bf16 %v3038_v51, %v3037_v15  ;;  %v3040_v46 = vmax.f32 %v3008_v13, 0.0 }
 0x205   : > { %v3039_v49 = vmax.f32 %v3007_v37, 0.0  ;;  %3752 = vst [vmem:[%s6205_s6 + $0x70] sm:$0xff] %v3732_v39  }
 0x207   : > { %v3737_v63 = vpack.c.bf16 %v3040_v46, %v3039_v49 }
 0x209   : > { %3753 = vst [vmem:[%s6205_s6 + $0x78] sm:$0xff] %v3737_v63  }
 0x20a   : > { %4558 = shalt.err (!%p4555_p3)
}
 0x20b   : > { %s4559_s25 = scalar_lea.hbm %s6323_s11, 2048  ;;  %s4563_s28 = scalar_lea.hbm %s6373_s3, 4096 }
 0x20c   : > { %p4560_p4 = scmp.ne.s32.totalorder %s6323_s11, %s4559_s25  ;;  %p4564_p9 = scmp.lt.s32.totalorder %s6323_s11, %s6373_s3 }
 0x20d   : > { %p4565_p10 = scmp.lt.s32.totalorder %s4563_s28, %s4559_s25 }
 0x20e   : > { %p4561_p7 = pnand %p4560_p4, %p4668_p5 }
 0x20f   : > { %p4566_p11 = por %p4565_p10, %p4564_p9 }
 0x210   : > { %p4562_p8 = pneg %p4561_p7 }
 0x212   : > { %p4567_p12 = pnand %p4566_p11, %p4562_p8 }
 0x214   : > { %4570 = shalt.err (!%p4567_p12)
}
 0x215   : > { %s4608_s4 = smov 64   ;;  %s4609_s5 = smov 4  }
 0x216   : > { %4504 = dma.vmem_to_hbm [thread:$0]  (%p4668_p5), %s6325_s8, 2048, %s6323_s11, %s6330_s17, %s4608_s4, %s4608_s4, %s4609_s5  }
 0x217 PF: > { %p4510_p13 = scmp.ge.s32.totalorder %s4605_s15, 2  ;;  %s3230_s6 = sand.u32 1, %s4593_s12  }
 0x218   : > { %s3231_s7 = scalar_lea.sflag [#allocation3], %s3230_s6 }
 0x219   : > { %p4507_p0 = pnand %p4510_p13, %p4672_p6 }
 0x21b   : > { %p4508_p1 = pneg %p4507_p0 }
 0x21d   : > { %4588 = dma.done.wait (%p4508_p1), %s3231_s7, 2048  }
 0x21e   : > { %4590 = vsyncadd (%p4508_p1), %s3231_s7, 4294965248  ;;  %p13_p2 = scmp.ge.s32.totalorder %s4655_s18, 4   ;;  %s6670_s12 = smov %s4597_s13 }
 0x21f   : > { %s6671_s13 = smov %s4601_s14  ;;  %s6672_s14 = smov %s4666_s21 }
 0x220   : > { %s6673_s15 = smov %s4655_s18  ;;  %15 = sbr.rel (!%p13_p2) target bundleno = 3 (0x3), region = 75 }
 0x225   :  { %3236 = vsyncpa [#allocation3], 1 }
 0x226   :  { %3238 = vsyncpa [#allocation3 + $0x1], 1 }

</bundles_post_ra>
